<compile_context>
chip_gen: v7x
topology: tpu7x:2x2x1
jax: 0.10.0
libtpu: 0.0.40
codegen_flags: <defaults>
</compile_context>

<pallas_src>
import functools
import math

import jax
import jax.numpy as jnp
from jax.experimental import pallas as pl
from jax.experimental.pallas import tpu as pltpu


def _mp_conv_kernel(x_ref, w_ref, b_ref, o_ref, acc_ref, *,
                    KH, KW, stride, tile_oh, OW):
    """One grid step = one output-row strip of one image.

    x_ref   : (strip_h_in, Wp, Cin)    input strip (compute dtype), one HBM read
    w_ref   : (KH*KW, Cin, Cout_pad)   normalized weight (compute dtype), resident
    b_ref   : (1, Cout_pad)            bias, float32
    o_ref   : (tile_oh*OW, Cout_pad)   output strip (out dtype), lane-dense store
    acc_ref : (tile_oh*OW, Cout_pad)   float32 accumulator scratch
    """
    m_t = tile_oh * OW
    row_span = (tile_oh - 1) * stride + 1
    col_span = (OW - 1) * stride + 1
    first = True
    for ky in range(KH):
        for kx in range(KW):
            win = x_ref[pl.ds(ky, row_span), pl.ds(kx, col_span), :]
            if stride > 1:
                # TODO(synk): strided in-register subsample; consider a
                # wrapper-side phase split if this lowering proves slow.
                win = win[::stride, ::stride, :]
            a = win.reshape(m_t, win.shape[-1])
            d = jnp.dot(a, w_ref[ky * KW + kx],
                        preferred_element_type=jnp.float32)
            if first:
                acc_ref[...] = d + b_ref[...]
                first = False
            else:
                acc_ref[...] += d
    o_ref[...] = acc_ref[...].astype(o_ref.dtype)


def _round_up(v, m):
    return ((v + m - 1) // m) * m


def _vmem_capacity_bytes():
    try:
        cap = getattr(pltpu.get_tpu_info(), "vmem_capacity_bytes", None)
        if cap:
            return int(cap)
    except Exception:
        pass
    return 64 * 2 ** 20          # conservative (v7x-sized) fallback


def magnitude_preserving_conv2d(x, weight, bias=None, stride=1, padding=0,
                                eps=1e-4, compute_dtype=jnp.bfloat16,
                                out_dtype=None, out_layout="NCHW",
                                tile_oh=None):
    """x: (N, Cin, H, W); weight: (Cout, Cin, KH, KW); bias: (Cout,) or None."""
    N, Cin, H, W = x.shape
    Cout, _, KH, KW = weight.shape
    fan_in = Cin * KH * KW
    out_dtype = x.dtype if out_dtype is None else out_dtype

    OH = (H + 2 * padding - KH) // stride + 1
    OW = (W + 2 * padding - KW) // stride + 1

    # ---- normalized weight + bias (tiny, plain JAX: hoisted out of kernel) ---
    w32 = weight.astype(jnp.float32)
    norm = jnp.sqrt(jnp.sum(w32 * w32, axis=(1, 2, 3), keepdims=True))
    w_eff = w32 / (math.sqrt(fan_in) * eps + norm)   # == normalize(w)/sqrt(fan_in)
    Cout_pad = _round_up(Cout, 128)                  # lane-dense output stores
    w_eff = w_eff.transpose(2, 3, 1, 0).reshape(KH * KW, Cin, Cout)
    w_eff = jnp.pad(w_eff, ((0, 0), (0, 0), (0, Cout_pad - Cout)))
    w_eff = w_eff.astype(compute_dtype)
    if bias is None:
        b_mat = jnp.zeros((1, Cout_pad), jnp.float32)
    else:
        b_mat = jnp.pad(bias.reshape(1, Cout).astype(jnp.float32),
                        ((0, 0), (0, Cout_pad - Cout)))

    # ---- strip tiling over output rows (VMEM budget aware) -------------------
    Wp = W + 2 * padding
    bytes_cd = jnp.dtype(compute_dtype).itemsize
    bytes_out = jnp.dtype(out_dtype).itemsize
    vmem_cap = _vmem_capacity_bytes()
    vmem_budget = int(vmem_cap * 0.70)

    def vmem_est(toh):
        rows = (toh - 1) * stride + KH
        m = toh * OW
        return (2 * rows * Wp * Cin * bytes_cd              # double-buffered input strip
                + 2 * KH * KW * Cin * Cout_pad * bytes_cd   # resident weight (x2: safe)
                + 2 * m * Cout_pad * bytes_out              # double-buffered output strip
                + m * Cout_pad * 4                          # f32 accumulator scratch
                + 2 * Cout_pad * 4)                         # bias

    if tile_oh is None:
        tile_oh = min(OH, max(1, -(-1024 // OW)))           # aim ~1024 output px / strip
    tile_oh = max(1, min(int(tile_oh), OH))
    while tile_oh > 1 and vmem_est(tile_oh) > vmem_budget:
        tile_oh = max(1, tile_oh // 2)

    n_strips = -(-OH // tile_oh)
    strip_h_in = (tile_oh - 1) * stride + KH
    rows_needed = (n_strips * tile_oh - 1) * stride + KH
    m_t = tile_oh * OW

    # ---- input prep: NCHW -> padded NHWC -> row strips with halo -------------
    x_nhwc = x.transpose(0, 2, 3, 1).astype(compute_dtype)
    pad_bot = padding + max(0, rows_needed - (H + 2 * padding))
    x_nhwc = jnp.pad(x_nhwc, ((0, 0), (padding, pad_bot),
                              (padding, padding), (0, 0)))
    if n_strips == 1:
        x_strips = x_nhwc[:, :strip_h_in]
    else:
        row_idx = (jnp.arange(n_strips)[:, None] * (tile_oh * stride)
                   + jnp.arange(strip_h_in)[None, :])
        x_strips = x_nhwc[:, row_idx]        # (N, n_strips, strip_h_in, Wp, Cin)
    x_strips = x_strips.reshape(N * n_strips, strip_h_in, Wp, Cin)

    est = vmem_est(tile_oh)
    vmem_limit = int(min(int(vmem_cap * 0.85),
                         max(32 * 2 ** 20, int(est * 1.5))))

    out = pl.pallas_call(
        functools.partial(_mp_conv_kernel, KH=KH, KW=KW, stride=stride,
                          tile_oh=tile_oh, OW=OW),
        out_shape=jax.ShapeDtypeStruct((N * n_strips, m_t, Cout_pad), out_dtype),
        grid_spec=pltpu.PrefetchScalarGridSpec(
            num_scalar_prefetch=0,
            grid=(N * n_strips,),
            in_specs=[
                pl.BlockSpec((None, strip_h_in, Wp, Cin),
                             lambda i: (i, 0, 0, 0)),        # input strip: 1 HBM read
                pl.BlockSpec((KH * KW, Cin, Cout_pad),
                             lambda i: (0, 0, 0)),           # weight: constant -> resident
                pl.BlockSpec((1, Cout_pad), lambda i: (0, 0)),
            ],
            out_specs=pl.BlockSpec((None, m_t, Cout_pad), lambda i: (i, 0, 0)),
            scratch_shapes=[pltpu.VMEM((m_t, Cout_pad), jnp.float32)],
        ),
        compiler_params=pltpu.CompilerParams(
            dimension_semantics=("parallel",),   # megacore shards the strip axis (v7x)
            vmem_limit_bytes=vmem_limit),
    )(x_strips, w_eff, b_mat)

    out = out.reshape(N, n_strips * tile_oh, OW, Cout_pad)[:, :OH, :, :Cout]
    if out_layout == "NHWC":
        return out
    return out.transpose(0, 3, 1, 2)


def _reference(x, weight, bias, stride, padding, eps=1e-4):
    """Pure-JAX reference mirroring the PyTorch forward (eval mode)."""
    Cout = weight.shape[0]
    fan_in = weight[0].size
    w32 = weight.astype(jnp.float32)
    n = jnp.sqrt(jnp.sum(w32 ** 2, axis=(1, 2, 3), keepdims=True))
    w = w32 / (math.sqrt(fan_in) * eps + n)
    y = jax.lax.conv_general_dilated(
        x, w, window_strides=(stride, stride),
        padding=[(padding, padding), (padding, padding)],
        dimension_numbers=("NCHW", "OIHW", "NCHW"),
        precision=jax.lax.Precision.HIGHEST)
    if bias is not None:
        y = y + bias.reshape(1, Cout, 1, 1)
    return y


if __name__ == "__main__":
    key = jax.random.PRNGKey(0)
    kx_, kw_, kb_ = jax.random.split(key, 3)

    in_channels, out_channels, kernel_size = 4, 8, 3
    stride, padding = 1, 1
    N, H, W = 2, 16, 16

    x = jax.random.normal(kx_, (N, in_channels, H, W), dtype=jnp.float32)
    weight = jax.random.normal(
        kw_, (out_channels, in_channels, kernel_size, kernel_size),
        dtype=jnp.float32)                          # torch.randn analogue
    bias = 0.1 * jax.random.normal(kb_, (out_channels,), dtype=jnp.float32)

    y_ref = _reference(x, weight, bias, stride, padding)

    # float32 compute path (single strip per image) -- tight check.
    y32 = magnitude_preserving_conv2d(x, weight, bias, stride=stride,
                                      padding=padding,
                                      compute_dtype=jnp.float32)
    y32 = jax.block_until_ready(y32)
    assert y32.shape == y_ref.shape == (N, out_channels, H, W)
    assert jnp.allclose(y32, y_ref, atol=5e-3, rtol=5e-3)

    # bf16 MXU inputs, f32 accumulation -- loose check.
    ybf = magnitude_preserving_conv2d(x, weight, bias, stride=stride,
                                      padding=padding,
                                      compute_dtype=jnp.bfloat16)
    ybf = jax.block_until_ready(ybf)
    assert ybf.shape == y_ref.shape
    assert jnp.allclose(ybf, y_ref, atol=3e-2, rtol=3e-2)

    # Force the multi-strip (halo gather) path.
    yms = magnitude_preserving_conv2d(x, weight, bias, stride=stride,
                                      padding=padding,
                                      compute_dtype=jnp.float32, tile_oh=4)
    yms = jax.block_until_ready(yms)
    assert jnp.allclose(yms, y_ref, atol=5e-3, rtol=5e-3)

    print("KERNEL_OK")
</pallas_src>

<mosaic_0001>
module attributes {stable_mosaic.version = 11 : i64} {
  func.func @_mp_conv_kernel(%arg0: i32, %arg1: memref<1x18x18x4xf32, #tpu.memory_space<vmem>>, %arg2: memref<9x4x128xf32, #tpu.memory_space<vmem>>, %arg3: memref<1x128xf32, #tpu.memory_space<vmem>>, %arg4: memref<1x256x128xf32, #tpu.memory_space<vmem>>, %arg5: memref<256x128xf32, #tpu.memory_space<vmem>>) attributes {dimension_semantics = [#tpu.dimension_semantics<parallel>], iteration_bounds = array<i64: 2>, scalar_prefetch = 0 : i64, scratch_operands = 1 : i64, tpu.core_type = #tpu.core_type<tc>, window_params = [{transform_indices = @transform_0, window_bounds = array<i64: 1, 18, 18, 4>}, {pipeline_mode = #tpu.pipeline_mode<synchronous>, transform_indices = @transform_1, window_bounds = array<i64: 9, 4, 128>}, {pipeline_mode = #tpu.pipeline_mode<synchronous>, transform_indices = @transform_2, window_bounds = array<i64: 1, 128>}, {transform_indices = @transform_3, window_bounds = array<i64: 1, 256, 128>}]} {
    %c0 = arith.constant 0 : index
    %c0_0 = arith.constant 0 : index
    %c0_1 = arith.constant 0 : index
    %c0_2 = arith.constant 0 : index
    %0 = vector.load %arg1[%c0, %c0_0, %c0_1, %c0_2] : memref<1x18x18x4xf32, #tpu.memory_space<vmem>>, vector<1x16x16x4xf32>
    %1 = vector.shape_cast %0 : vector<1x16x16x4xf32> to vector<16x16x4xf32>
    %2 = vector.shape_cast %1 : vector<16x16x4xf32> to vector<256x4xf32>
    %c0_3 = arith.constant 0 : index
    %c0_4 = arith.constant 0 : index
    %c0_5 = arith.constant 0 : index
    %3 = vector.load %arg2[%c0_3, %c0_4, %c0_5] : memref<9x4x128xf32, #tpu.memory_space<vmem>>, vector<1x4x128xf32>
    %4 = vector.shape_cast %3 : vector<1x4x128xf32> to vector<4x128xf32>
    %cst = arith.constant dense<0.000000e+00> : vector<256x128xf32>
    %5 = tpu.matmul %2, %4, %cst {dimension_numbers = #tpu.dot_dimension_numbers<[1], [0], [0], [1], [0, 0, 1, 1], [], []>} : vector<256x4xf32>, vector<4x128xf32>, vector<256x128xf32> -> vector<256x128xf32>
    %c0_6 = arith.constant 0 : index
    %c0_7 = arith.constant 0 : index
    %6 = vector.load %arg3[%c0_6, %c0_7] : memref<1x128xf32, #tpu.memory_space<vmem>>, vector<1x128xf32>
    %7 = vector.broadcast %6 : vector<1x128xf32> to vector<256x128xf32>
    %8 = arith.addf %5, %7 : vector<256x128xf32>
    %c0_8 = arith.constant 0 : index
    %c0_9 = arith.constant 0 : index
    %9 = vector.load %arg5[%c0_8, %c0_9] : memref<256x128xf32, #tpu.memory_space<vmem>>, vector<256x128xf32>
    tpu.vector_store %arg5[%c0_8, %c0_9], %8 {strides = array<i32>} : memref<256x128xf32, #tpu.memory_space<vmem>>, vector<256x128xf32>,
    %c0_10 = arith.constant 0 : index
    %c0_11 = arith.constant 0 : index
    %c1 = arith.constant 1 : index
    %c0_12 = arith.constant 0 : index
    %10 = vector.load %arg1[%c0_10, %c0_11, %c1, %c0_12] : memref<1x18x18x4xf32, #tpu.memory_space<vmem>>, vector<1x16x16x4xf32>
    %11 = vector.shape_cast %10 : vector<1x16x16x4xf32> to vector<16x16x4xf32>
    %12 = vector.shape_cast %11 : vector<16x16x4xf32> to vector<256x4xf32>
    %c1_13 = arith.constant 1 : index
    %c0_14 = arith.constant 0 : index
    %c0_15 = arith.constant 0 : index
    %13 = vector.load %arg2[%c1_13, %c0_14, %c0_15] : memref<9x4x128xf32, #tpu.memory_space<vmem>>, vector<1x4x128xf32>
    %14 = vector.shape_cast %13 : vector<1x4x128xf32> to vector<4x128xf32>
    %cst_16 = arith.constant dense<0.000000e+00> : vector<256x128xf32>
    %15 = tpu.matmul %12, %14, %cst_16 {dimension_numbers = #tpu.dot_dimension_numbers<[1], [0], [0], [1], [0, 0, 1, 1], [], []>} : vector<256x4xf32>, vector<4x128xf32>, vector<256x128xf32> -> vector<256x128xf32>
    %c0_17 = arith.constant 0 : index
    %c0_18 = arith.constant 0 : index
    %16 = vector.load %arg5[%c0_17, %c0_18] : memref<256x128xf32, #tpu.memory_space<vmem>>, vector<256x128xf32>
    %17 = arith.addf %16, %15 : vector<256x128xf32>
    %c0_19 = arith.constant 0 : index
    %c0_20 = arith.constant 0 : index
    %18 = vector.load %arg5[%c0_19, %c0_20] : memref<256x128xf32, #tpu.memory_space<vmem>>, vector<256x128xf32>
    tpu.vector_store %arg5[%c0_19, %c0_20], %17 {strides = array<i32>} : memref<256x128xf32, #tpu.memory_space<vmem>>, vector<256x128xf32>,
    %c0_21 = arith.constant 0 : index
    %c0_22 = arith.constant 0 : index
    %c2 = arith.constant 2 : index
    %c0_23 = arith.constant 0 : index
    %19 = vector.load %arg1[%c0_21, %c0_22, %c2, %c0_23] : memref<1x18x18x4xf32, #tpu.memory_space<vmem>>, vector<1x16x16x4xf32>
    %20 = vector.shape_cast %19 : vector<1x16x16x4xf32> to vector<16x16x4xf32>
    %21 = vector.shape_cast %20 : vector<16x16x4xf32> to vector<256x4xf32>
    %c2_24 = arith.constant 2 : index
    %c0_25 = arith.constant 0 : index
    %c0_26 = arith.constant 0 : index
    %22 = vector.load %arg2[%c2_24, %c0_25, %c0_26] : memref<9x4x128xf32, #tpu.memory_space<vmem>>, vector<1x4x128xf32>
    %23 = vector.shape_cast %22 : vector<1x4x128xf32> to vector<4x128xf32>
    %cst_27 = arith.constant dense<0.000000e+00> : vector<256x128xf32>
    %24 = tpu.matmul %21, %23, %cst_27 {dimension_numbers = #tpu.dot_dimension_numbers<[1], [0], [0], [1], [0, 0, 1, 1], [], []>} : vector<256x4xf32>, vector<4x128xf32>, vector<256x128xf32> -> vector<256x128xf32>
    %c0_28 = arith.constant 0 : index
    %c0_29 = arith.constant 0 : index
    %25 = vector.load %arg5[%c0_28, %c0_29] : memref<256x128xf32, #tpu.memory_space<vmem>>, vector<256x128xf32>
    %26 = arith.addf %25, %24 : vector<256x128xf32>
    %c0_30 = arith.constant 0 : index
    %c0_31 = arith.constant 0 : index
    %27 = vector.load %arg5[%c0_30, %c0_31] : memref<256x128xf32, #tpu.memory_space<vmem>>, vector<256x128xf32>
    tpu.vector_store %arg5[%c0_30, %c0_31], %26 {strides = array<i32>} : memref<256x128xf32, #tpu.memory_space<vmem>>, vector<256x128xf32>,
    %c0_32 = arith.constant 0 : index
    %c1_33 = arith.constant 1 : index
    %c0_34 = arith.constant 0 : index
    %c0_35 = arith.constant 0 : index
    %28 = vector.load %arg1[%c0_32, %c1_33, %c0_34, %c0_35] : memref<1x18x18x4xf32, #tpu.memory_space<vmem>>, vector<1x16x16x4xf32>
    %29 = vector.shape_cast %28 : vector<1x16x16x4xf32> to vector<16x16x4xf32>
    %30 = vector.shape_cast %29 : vector<16x16x4xf32> to vector<256x4xf32>
    %c3 = arith.constant 3 : index
    %c0_36 = arith.constant 0 : index
    %c0_37 = arith.constant 0 : index
    %31 = vector.load %arg2[%c3, %c0_36, %c0_37] : memref<9x4x128xf32, #tpu.memory_space<vmem>>, vector<1x4x128xf32>
    %32 = vector.shape_cast %31 : vector<1x4x128xf32> to vector<4x128xf32>
    %cst_38 = arith.constant dense<0.000000e+00> : vector<256x128xf32>
    %33 = tpu.matmul %30, %32, %cst_38 {dimension_numbers = #tpu.dot_dimension_numbers<[1], [0], [0], [1], [0, 0, 1, 1], [], []>} : vector<256x4xf32>, vector<4x128xf32>, vector<256x128xf32> -> vector<256x128xf32>
    %c0_39 = arith.constant 0 : index
    %c0_40 = arith.constant 0 : index
    %34 = vector.load %arg5[%c0_39, %c0_40] : memref<256x128xf32, #tpu.memory_space<vmem>>, vector<256x128xf32>
    %35 = arith.addf %34, %33 : vector<256x128xf32>
    %c0_41 = arith.constant 0 : index
    %c0_42 = arith.constant 0 : index
    %36 = vector.load %arg5[%c0_41, %c0_42] : memref<256x128xf32, #tpu.memory_space<vmem>>, vector<256x128xf32>
    tpu.vector_store %arg5[%c0_41, %c0_42], %35 {strides = array<i32>} : memref<256x128xf32, #tpu.memory_space<vmem>>, vector<256x128xf32>,
    %c0_43 = arith.constant 0 : index
    %c1_44 = arith.constant 1 : index
    %c1_45 = arith.constant 1 : index
    %c0_46 = arith.constant 0 : index
    %37 = vector.load %arg1[%c0_43, %c1_44, %c1_45, %c0_46] : memref<1x18x18x4xf32, #tpu.memory_space<vmem>>, vector<1x16x16x4xf32>
    %38 = vector.shape_cast %37 : vector<1x16x16x4xf32> to vector<16x16x4xf32>
    %39 = vector.shape_cast %38 : vector<16x16x4xf32> to vector<256x4xf32>
    %c4 = arith.constant 4 : index
    %c0_47 = arith.constant 0 : index
    %c0_48 = arith.constant 0 : index
    %40 = vector.load %arg2[%c4, %c0_47, %c0_48] : memref<9x4x128xf32, #tpu.memory_space<vmem>>, vector<1x4x128xf32>
    %41 = vector.shape_cast %40 : vector<1x4x128xf32> to vector<4x128xf32>
    %cst_49 = arith.constant dense<0.000000e+00> : vector<256x128xf32>
    %42 = tpu.matmul %39, %41, %cst_49 {dimension_numbers = #tpu.dot_dimension_numbers<[1], [0], [0], [1], [0, 0, 1, 1], [], []>} : vector<256x4xf32>, vector<4x128xf32>, vector<256x128xf32> -> vector<256x128xf32>
    %c0_50 = arith.constant 0 : index
    %c0_51 = arith.constant 0 : index
    %43 = vector.load %arg5[%c0_50, %c0_51] : memref<256x128xf32, #tpu.memory_space<vmem>>, vector<256x128xf32>
    %44 = arith.addf %43, %42 : vector<256x128xf32>
    %c0_52 = arith.constant 0 : index
    %c0_53 = arith.constant 0 : index
    %45 = vector.load %arg5[%c0_52, %c0_53] : memref<256x128xf32, #tpu.memory_space<vmem>>, vector<256x128xf32>
    tpu.vector_store %arg5[%c0_52, %c0_53], %44 {strides = array<i32>} : memref<256x128xf32, #tpu.memory_space<vmem>>, vector<256x128xf32>,
    %c0_54 = arith.constant 0 : index
    %c1_55 = arith.constant 1 : index
    %c2_56 = arith.constant 2 : index
    %c0_57 = arith.constant 0 : index
    %46 = vector.load %arg1[%c0_54, %c1_55, %c2_56, %c0_57] : memref<1x18x18x4xf32, #tpu.memory_space<vmem>>, vector<1x16x16x4xf32>
    %47 = vector.shape_cast %46 : vector<1x16x16x4xf32> to vector<16x16x4xf32>
    %48 = vector.shape_cast %47 : vector<16x16x4xf32> to vector<256x4xf32>
    %c5 = arith.constant 5 : index
    %c0_58 = arith.constant 0 : index
    %c0_59 = arith.constant 0 : index
    %49 = vector.load %arg2[%c5, %c0_58, %c0_59] : memref<9x4x128xf32, #tpu.memory_space<vmem>>, vector<1x4x128xf32>
    %50 = vector.shape_cast %49 : vector<1x4x128xf32> to vector<4x128xf32>
    %cst_60 = arith.constant dense<0.000000e+00> : vector<256x128xf32>
    %51 = tpu.matmul %48, %50, %cst_60 {dimension_numbers = #tpu.dot_dimension_numbers<[1], [0], [0], [1], [0, 0, 1, 1], [], []>} : vector<256x4xf32>, vector<4x128xf32>, vector<256x128xf32> -> vector<256x128xf32>
    %c0_61 = arith.constant 0 : index
    %c0_62 = arith.constant 0 : index
    %52 = vector.load %arg5[%c0_61, %c0_62] : memref<256x128xf32, #tpu.memory_space<vmem>>, vector<256x128xf32>
    %53 = arith.addf %52, %51 : vector<256x128xf32>
    %c0_63 = arith.constant 0 : index
    %c0_64 = arith.constant 0 : index
    %54 = vector.load %arg5[%c0_63, %c0_64] : memref<256x128xf32, #tpu.memory_space<vmem>>, vector<256x128xf32>
    tpu.vector_store %arg5[%c0_63, %c0_64], %53 {strides = array<i32>} : memref<256x128xf32, #tpu.memory_space<vmem>>, vector<256x128xf32>,
    %c0_65 = arith.constant 0 : index
    %c2_66 = arith.constant 2 : index
    %c0_67 = arith.constant 0 : index
    %c0_68 = arith.constant 0 : index
    %55 = vector.load %arg1[%c0_65, %c2_66, %c0_67, %c0_68] : memref<1x18x18x4xf32, #tpu.memory_space<vmem>>, vector<1x16x16x4xf32>
    %56 = vector.shape_cast %55 : vector<1x16x16x4xf32> to vector<16x16x4xf32>
    %57 = vector.shape_cast %56 : vector<16x16x4xf32> to vector<256x4xf32>
    %c6 = arith.constant 6 : index
    %c0_69 = arith.constant 0 : index
    %c0_70 = arith.constant 0 : index
    %58 = vector.load %arg2[%c6, %c0_69, %c0_70] : memref<9x4x128xf32, #tpu.memory_space<vmem>>, vector<1x4x128xf32>
    %59 = vector.shape_cast %58 : vector<1x4x128xf32> to vector<4x128xf32>
    %cst_71 = arith.constant dense<0.000000e+00> : vector<256x128xf32>
    %60 = tpu.matmul %57, %59, %cst_71 {dimension_numbers = #tpu.dot_dimension_numbers<[1], [0], [0], [1], [0, 0, 1, 1], [], []>} : vector<256x4xf32>, vector<4x128xf32>, vector<256x128xf32> -> vector<256x128xf32>
    %c0_72 = arith.constant 0 : index
    %c0_73 = arith.constant 0 : index
    %61 = vector.load %arg5[%c0_72, %c0_73] : memref<256x128xf32, #tpu.memory_space<vmem>>, vector<256x128xf32>
    %62 = arith.addf %61, %60 : vector<256x128xf32>
    %c0_74 = arith.constant 0 : index
    %c0_75 = arith.constant 0 : index
    %63 = vector.load %arg5[%c0_74, %c0_75] : memref<256x128xf32, #tpu.memory_space<vmem>>, vector<256x128xf32>
    tpu.vector_store %arg5[%c0_74, %c0_75], %62 {strides = array<i32>} : memref<256x128xf32, #tpu.memory_space<vmem>>, vector<256x128xf32>,
    %c0_76 = arith.constant 0 : index
    %c2_77 = arith.constant 2 : index
    %c1_78 = arith.constant 1 : index
    %c0_79 = arith.constant 0 : index
    %64 = vector.load %arg1[%c0_76, %c2_77, %c1_78, %c0_79] : memref<1x18x18x4xf32, #tpu.memory_space<vmem>>, vector<1x16x16x4xf32>
    %65 = vector.shape_cast %64 : vector<1x16x16x4xf32> to vector<16x16x4xf32>
    %66 = vector.shape_cast %65 : vector<16x16x4xf32> to vector<256x4xf32>
    %c7 = arith.constant 7 : index
    %c0_80 = arith.constant 0 : index
    %c0_81 = arith.constant 0 : index
    %67 = vector.load %arg2[%c7, %c0_80, %c0_81] : memref<9x4x128xf32, #tpu.memory_space<vmem>>, vector<1x4x128xf32>
    %68 = vector.shape_cast %67 : vector<1x4x128xf32> to vector<4x128xf32>
    %cst_82 = arith.constant dense<0.000000e+00> : vector<256x128xf32>
    %69 = tpu.matmul %66, %68, %cst_82 {dimension_numbers = #tpu.dot_dimension_numbers<[1], [0], [0], [1], [0, 0, 1, 1], [], []>} : vector<256x4xf32>, vector<4x128xf32>, vector<256x128xf32> -> vector<256x128xf32>
    %c0_83 = arith.constant 0 : index
    %c0_84 = arith.constant 0 : index
    %70 = vector.load %arg5[%c0_83, %c0_84] : memref<256x128xf32, #tpu.memory_space<vmem>>, vector<256x128xf32>
    %71 = arith.addf %70, %69 : vector<256x128xf32>
    %c0_85 = arith.constant 0 : index
    %c0_86 = arith.constant 0 : index
    %72 = vector.load %arg5[%c0_85, %c0_86] : memref<256x128xf32, #tpu.memory_space<vmem>>, vector<256x128xf32>
    tpu.vector_store %arg5[%c0_85, %c0_86], %71 {strides = array<i32>} : memref<256x128xf32, #tpu.memory_space<vmem>>, vector<256x128xf32>,
    %c0_87 = arith.constant 0 : index
    %c2_88 = arith.constant 2 : index
    %c2_89 = arith.constant 2 : index
    %c0_90 = arith.constant 0 : index
    %73 = vector.load %arg1[%c0_87, %c2_88, %c2_89, %c0_90] : memref<1x18x18x4xf32, #tpu.memory_space<vmem>>, vector<1x16x16x4xf32>
    %74 = vector.shape_cast %73 : vector<1x16x16x4xf32> to vector<16x16x4xf32>
    %75 = vector.shape_cast %74 : vector<16x16x4xf32> to vector<256x4xf32>
    %c8 = arith.constant 8 : index
    %c0_91 = arith.constant 0 : index
    %c0_92 = arith.constant 0 : index
    %76 = vector.load %arg2[%c8, %c0_91, %c0_92] : memref<9x4x128xf32, #tpu.memory_space<vmem>>, vector<1x4x128xf32>
    %77 = vector.shape_cast %76 : vector<1x4x128xf32> to vector<4x128xf32>
    %cst_93 = arith.constant dense<0.000000e+00> : vector<256x128xf32>
    %78 = tpu.matmul %75, %77, %cst_93 {dimension_numbers = #tpu.dot_dimension_numbers<[1], [0], [0], [1], [0, 0, 1, 1], [], []>} : vector<256x4xf32>, vector<4x128xf32>, vector<256x128xf32> -> vector<256x128xf32>
    %c0_94 = arith.constant 0 : index
    %c0_95 = arith.constant 0 : index
    %79 = vector.load %arg5[%c0_94, %c0_95] : memref<256x128xf32, #tpu.memory_space<vmem>>, vector<256x128xf32>
    %80 = arith.addf %79, %78 : vector<256x128xf32>
    %c0_96 = arith.constant 0 : index
    %c0_97 = arith.constant 0 : index
    %81 = vector.load %arg5[%c0_96, %c0_97] : memref<256x128xf32, #tpu.memory_space<vmem>>, vector<256x128xf32>
    tpu.vector_store %arg5[%c0_96, %c0_97], %80 {strides = array<i32>} : memref<256x128xf32, #tpu.memory_space<vmem>>, vector<256x128xf32>,
    %c0_98 = arith.constant 0 : index
    %c0_99 = arith.constant 0 : index
    %82 = vector.load %arg5[%c0_98, %c0_99] : memref<256x128xf32, #tpu.memory_space<vmem>>, vector<256x128xf32>
    %c0_100 = arith.constant 0 : index
    %c0_101 = arith.constant 0 : index
    %c0_102 = arith.constant 0 : index
    %83 = vector.load %arg4[%c0_100, %c0_101, %c0_102] : memref<1x256x128xf32, #tpu.memory_space<vmem>>, vector<1x256x128xf32>
    %84 = vector.shape_cast %83 : vector<1x256x128xf32> to vector<256x128xf32>
    %85 = vector.shape_cast %82 : vector<256x128xf32> to vector<1x256x128xf32>
    tpu.vector_store %arg4[%c0_100, %c0_101, %c0_102], %85 {strides = array<i32>} : memref<1x256x128xf32, #tpu.memory_space<vmem>>, vector<1x256x128xf32>,
    return
  }
  func.func @transform_0(%arg0: i32) -> (i32, i32, i32, i32) {
    %c0_i32 = arith.constant 0 : i32
    %c0_i32_0 = arith.constant 0 : i32
    %c0_i32_1 = arith.constant 0 : i32
    %c0_i32_2 = arith.constant 0 : i32
    return %arg0, %c0_i32, %c0_i32_0, %c0_i32_1 : i32, i32, i32, i32
  }
  func.func @transform_1(%arg0: i32) -> (i32, i32, i32) {
    %c0_i32 = arith.constant 0 : i32
    %c0_i32_0 = arith.constant 0 : i32
    %c0_i32_1 = arith.constant 0 : i32
    %c0_i32_2 = arith.constant 0 : i32
    return %c0_i32, %c0_i32_0, %c0_i32_1 : i32, i32, i32
  }
  func.func @transform_2(%arg0: i32) -> (i32, i32) {
    %c0_i32 = arith.constant 0 : i32
    %c0_i32_0 = arith.constant 0 : i32
    %c0_i32_1 = arith.constant 0 : i32
    return %c0_i32, %c0_i32_0 : i32, i32
  }
  func.func @transform_3(%arg0: i32) -> (i32, i32, i32) {
    %c0_i32 = arith.constant 0 : i32
    %c0_i32_0 = arith.constant 0 : i32
    %c0_i32_1 = arith.constant 0 : i32
    return %arg0, %c0_i32, %c0_i32_0 : i32, i32, i32
  }
}

</mosaic_0001>

<bundles_post_ra>
// kernel: tpu_custom_call.1
= control target key start
LH: loop header
LB: loop body
LE: loop exit
PB: predicated region body
PF: predicated region fallthrough
CT: control target
= control target key end

     0   :  { %8 = vsyncpa [#allocation4], 0  ;;  %s7135_s0 = inlined_call_operand.vmem [shape: f32[2,18,18,4], index: 0, kind: input, shape index: {}]   ;;  %s7136_s1 = inlined_call_operand.vmem [shape: f32[9,4,128], index: 1, kind: input, shape index: {}]   ;;  %s7137_s2 = inlined_call_operand.vmem [shape: f32[1,128], index: 2, kind: input, shape index: {}]   ;;  %s7138_s3 = inlined_call_operand.hbm [shape: f32[2,256,128], index: 3, kind: output, shape index: {}]  }
   0x1   :  { %10 = vsyncpa [#allocation4 + $0x1], 0  ;;  %s6017_s12 = smov 0   ;;  %s6019_s13 = smov 0  }
   0x2   :  { %s6021_s14 = smov 0   ;;  %s6023_s15 = smov 0  }
   0x3 LB: > { %s6038_s16 = sadd.s32 4294967295, %s5992_s15   ;;  %s4341_s17 = sadd.s32 4294967294, %s5992_s15   ;;  %s5992_s15 = sphi %s6023_s15, %s7264_s15   ;;  %s5988_s14 = sphi %s6021_s14, %s7263_s14   ;;  %s5984_s13 = sphi %s6019_s13, %s7262_s13   ;;  %s5980_s12 = sphi %s6017_s12, %s7261_s12  }
   0x4   : > { %s6042_s18 = sadd.s32 1, %s5992_s15   ;;  %s91_s19 = sadd.s32 1, %s5988_s14 }
   0x5   : > { %s88_s20 = ssub.s32 %s5992_s15, %s6042_s18  ;;  %p101_p0 = scmp.ne.s32.totalorder %s5988_s14, %s5984_s13 }
   0x6   : > { %p89_p1 = scmp.eq.s32.totalorder %s88_s20, 0  ;;  %p102_p2 = scmp.eq.s32.totalorder %s6038_s16, 1 }
   0x7   : > { %p107_p3 = scmp.ne.s32.totalorder %s5984_s13, %s5980_s12  ;;  %p108_p4 = scmp.eq.s32.totalorder %s4341_s17, 1 }
   0x8   : > { %s6053_s21 = scalar_select %p89_p1, %s5988_s14, %s91_s19  }
   0x9   : > { %p6055_p5 = por %p102_p2, %p101_p0  ;;  %p6059_p6 = por %p108_p4, %p107_p3 }
   0xa   : > { %p4344_p7 = scmp.ge.s32.totalorder %s5992_s15, 1  ;;  %p140_p8 = scmp.lt.s32.totalorder %s5992_s15, 3 }
   0xc   : > { %p141_p9 = pnand %p4344_p7, %p140_p8 }
   0xe   : > { %144 = sbr.rel (%p141_p9) target bundleno = 546 (0x222), region = 32 }
  0x15   : > { %v201_v0 = vld [vmem:[%s7136_s1] sm:$0xf]  ;;  %vm306_vm0 = vcmask 1043456   ;;  %v6071_v1 = vld [vmem:[%s7136_s1 + $0x10] sm:$0xf]  ;;  %p164_p10 = scmp.lt.s32.totalorder %s6038_s16, 1 }
  0x16   : > { %5148 = vmatprep.subr.msk.mxu1 %vm306_vm0, %v201_v0  ;;  %5348 = vmatprep.subr.msk.mxu0 %vm306_vm0, %v6071_v1  ;;  %v4381_v2 = vld [vmem:[%s7136_s1 + $0x4] sm:$0xf]  ;;  %v4613_v3 = vld [vmem:[%s7136_s1 + $0x14] sm:$0xf]  ;;  %vm209_vm1 = vcmask 31744   ;;  %s161_s29 = sand.u32 1, %s5984_s13  }
  0x17   : > { %5149 = vmatpush3.msk.msra.mxu1 %vm306_vm0, %v201_v0  ;;  %s165_s5 = scalar_select %p164_p10, %s6038_s16, 1  ;;  %5349 = vmatpush3.msk.msra.mxu0 %vm306_vm0, %v6071_v1  ;;  %v6117_v10 = vld [vmem:[%s7136_s1 + $0x18] sm:$0xf]  ;;  %v6122_v11 = vld [vmem:[%s7136_s1 + $0x8] sm:$0xf] }
  0x18   : > { %5198 = vmatprep.subr.msk.mxu1 %vm306_vm0, %v4381_v2  ;;  %5398 = vmatprep.subr.msk.mxu0 %vm306_vm0, %v4613_v3  ;;  %v6289_v44 = vld [vmem:[%s7136_s1 + $0x1c] sm:$0xf]  ;;  %s4850_s7 = sshll.u32 %s6038_s16, 12  ;;  %s7094_s16 = scalar_lea.sflag [#allocation4], %s161_s29 }
  0x19   : > { %s5888_s6 = smul.u32 432, %s165_s5  ;;  %s4345_s5 = sshll.u32 %s161_s29, 8 }
  0x1a   : > { %s7086_s11 = scalar_lea.hbm %s7138_s3, %s4850_s7  ;;  %s5994_s19 = smov [#allocation3]  }
  0x1b   : > { %s6092_s9 = scalar_lea.vmem %s7135_s0, %s5888_s6  ;;  %s7020_s6 = scalar_lea.vmem [#allocation3], %s4345_s5 }
  0x1c   : > { %v169_v4 = vld [vmem:[%s6092_s9] sm:$0xff]  ;;  %v170_v6 = vld [vmem:[%s6092_s9 + $0x8] sm:$0xff]  ;;  %v6106_v8 = vld [vmem:[%s6092_s9 + $0x18] sm:$0xff]  ;;  %s4279_s8 = sshll.u32 %s7020_s6, 4  ;;  %s5934_s20 = sshll.u32 %s5994_s19, 4  ;;  %s7088_s8 = int_to_ptr.vmem [resolvable:$true] %s4279_s8  ;;  %s5935_s20 = int_to_ptr.vmem [resolvable:$false] %s5934_s20 }
  0x1d   : > { %v6096_v5 = vld [vmem:[%s6092_s9 + $0x19] sm:$0xff]  ;;  %5150 = vmatprep.mubr.msk.f32.mxu1 %vm209_vm1, %v169_v4  ;;  %v6103_v7 = vld [vmem:[%s6092_s9 + $0x21] sm:$0xff]  ;;  %7191 = vst [vmem:[#allocation6_spill] sm:$0xff] %v6106_v8  ;;  %v6109_v9 = vld [vmem:[%s6092_s9 + $0x31] sm:$0xff]  ;;  %s5930_s17 = scalar_lea.vmem %s7088_s8, 4096  ;;  %s5936_s24 = scalar_lea.vmem %s5935_s20, 8192 }
  0x1e   : > { %5350 = vmatprep.mubr.msk.f32.mxu0 %vm209_vm1, %v6096_v5  ;;  %5151 = vmatmul.mubr.msk.f32.vlgmr.msra.gmra.mrb[0].mxu1 %vm209_vm1, %v170_v6  ;;  %v6127_v12 = vld [vmem:[%s6092_s9 + $0x20] sm:$0xff]  ;;  %v6137_v14 = vld [vmem:[%s6092_s9 + $0x30] sm:$0xff]  ;;  %v6155_v16 = vld [vmem:[%s6092_s9 + $0x38] sm:$0xff]  ;;  %p5931_p11 = scmp.ne.s32.totalorder %s7088_s8, %s5930_s17  ;;  %p5937_p0 = scmp.lt.s32.totalorder %s7088_s8, %s5935_s20 }
  0x1f   : > { %5351 = vmatmul.mubr.msk.f32.vlgmr.msra.gmra.mrb[0].mxu0 %vm209_vm1, %v6103_v7  ;;  %5199 = vmatpush3.msk.msra.mxu1 %vm306_vm0, %v4381_v2  ;;  %7192 = vst [vmem:[#allocation7_spill] sm:$0xff] %v6127_v12  ;;  %v6130_v13 = vld [vmem:[%s6092_s9 + $0x39] sm:$0xff]  ;;  %7193 = vst [vmem:[#allocation8_spill] sm:$0xff] %v6137_v14  ;;  %v6140_v15 = vld [vmem:[%s6092_s9 + $0x49] sm:$0xff]  ;;  %p5938_p1 = scmp.lt.s32.totalorder %s5936_s24, %s5930_s17 }
  0x20   : > { %5399 = vmatpush3.msk.msra.mxu0 %vm306_vm0, %v4613_v3  ;;  %5153 = vmatprep.mubr.msk.f32.mxu1 %vm209_vm1, %v6106_v8  ;;  %v6158_v17 = vld [vmem:[%s6092_s9 + $0x51] sm:$0xff]  ;;  %v6161_v18 = vld [vmem:[%s6092_s9 + $0x48] sm:$0xff]  ;;  %v6181_v22 = vld [vmem:[%s6092_s9 + $0x60] sm:$0xff]  ;;  %p5932_p12 = pnand %p5931_p11, %p6055_p5 }
  0x21   : > { %5353 = vmatprep.mubr.msk.f32.mxu0 %vm209_vm1, %v6109_v9  ;;  %5448 = vmatprep.subr.msk.mxu0 %vm306_vm0, %v6117_v10  ;;  %7194 = vst [vmem:[#allocation9_spill] sm:$0xff] %v6161_v18  ;;  %v6164_v19 = vld [vmem:[%s6092_s9 + $0x61] sm:$0xff]  ;;  %v6175_v20 = vld [vmem:[%s6092_s9 + $0x50] sm:$0xff]  ;;  %7196 = vst [vmem:[#allocation11_spill] sm:$0xff] %v6181_v22  ;;  %p5939_p2 = por %p5938_p1, %p5937_p0 }
  0x22   : > { %5248 = vmatprep.subr.msk.mxu1 %vm306_vm0, %v6122_v11  ;;  %5154 = vmatmul.mubr.msk.f32.gmra.mrb[2].mxu1 %vm209_vm1, %v6127_v12  ;;  %7195 = vst [vmem:[#allocation10_spill] sm:$0xff] %v6175_v20  ;;  %v6178_v21 = vld [vmem:[%s6092_s9 + $0x69] sm:$0xff]  ;;  %v6184_v23 = vld [vmem:[%s6092_s9 + $0x79] sm:$0xff]  ;;  %v6198_v25 = vld [vmem:[%s6092_s9 + $0x81] sm:$0xff]  ;;  %p5933_p13 = pneg %p5932_p12 }
  0x23   : > { %5354 = vmatmul.mubr.msk.f32.gmra.mrb[2].mxu0 %vm209_vm1, %v6130_v13  ;;  %5156 = vmatprep.mubr.msk.f32.mxu1 %vm209_vm1, %v6137_v14  ;;  %v6195_v24 = vld [vmem:[%s6092_s9 + $0x68] sm:$0xff]  ;;  %v6201_v26 = vld [vmem:[%s6092_s9 + $0x78] sm:$0xff]  ;;  %v6215_v28 = vld [vmem:[%s6092_s9 + $0x80] sm:$0xff] }
  0x24   : > { %5356 = vmatprep.mubr.msk.f32.mxu0 %vm209_vm1, %v6140_v15  ;;  %7197 = vst [vmem:[#allocation12_spill] sm:$0xff] %v6195_v24  ;;  %7198 = vst [vmem:[#allocation13_spill] sm:$0xff] %v6201_v26  ;;  %v6204_v27 = vld [vmem:[%s6092_s9 + $0x91] sm:$0xff]  ;;  %v6218_v29 = vld [vmem:[%s6092_s9 + $0x99] sm:$0xff]  ;;  %p5940_p3 = pnand %p5939_p2, %p5933_p13 }
  0x25   : > { %7199 = vst [vmem:[#allocation14_spill] sm:$0xff] %v6215_v28  ;;  %v6221_v30 = vld [vmem:[%s6092_s9 + $0x90] sm:$0xff]  ;;  %v6235_v32 = vld [vmem:[%s6092_s9 + $0x98] sm:$0xff]  ;;  %v6241_v34 = vld [vmem:[%s6092_s9 + $0xa8] sm:$0xff] }
  0x26   : > { %5157 = vmatmul.mubr.msk.f32.gmra.mrb[4].mxu1 %vm209_vm1, %v6155_v16  ;;  %7200 = vst [vmem:[#allocation15_spill] sm:$0xff] %v6221_v30  ;;  %v6224_v31 = vld [vmem:[%s6092_s9 + $0xa9] sm:$0xff]  ;;  %7201 = vst [vmem:[#allocation16_spill] sm:$0xff] %v6235_v32  ;;  %v6238_v33 = vld [vmem:[%s6092_s9 + $0xb1] sm:$0xff] }
  0x27   : > { %5357 = vmatmul.mubr.msk.f32.gmra.mrb[4].mxu0 %vm209_vm1, %v6158_v17  ;;  %5159 = vmatprep.mubr.msk.f32.mxu1 %vm209_vm1, %v6161_v18  ;;  %7202 = vst [vmem:[#allocation17_spill] sm:$0xff] %v6241_v34  ;;  %v6244_v35 = vld [vmem:[%s6092_s9 + $0xc1] sm:$0xff]  ;;  %v6255_v36 = vld [vmem:[%s6092_s9 + $0xb0] sm:$0xff]  ;;  %v6281_v42 = vld [vmem:[%s6092_s9 + $0xd8] sm:$0xff] }
  0x28   : > { %5359 = vmatprep.mubr.msk.f32.mxu0 %vm209_vm1, %v6164_v19  ;;  %7203 = vst [vmem:[#allocation18_spill] sm:$0xff] %v6255_v36  ;;  %v6258_v37 = vld [vmem:[%s6092_s9 + $0xc9] sm:$0xff]  ;;  %v6261_v38 = vld [vmem:[%s6092_s9 + $0xc0] sm:$0xff]  ;;  %v6284_v43 = vld [vmem:[%s6092_s9 + $0x32] sm:$0xff] }
  0x29   : > { %v6264_v39 = vld [vmem:[%s6092_s9 + $0x1a] sm:$0xff]  ;;  %v6275_v40 = vld [vmem:[%s6092_s9 + $0xc8] sm:$0xff]  ;;  %v6308_v47 = vld [vmem:[%s6092_s9 + $0xf0] sm:$0xff] }
  0x2a   : > { %5160 = vmatmul.mubr.msk.f32.gmra.mrb[6].mxu1 %vm209_vm1, %v6175_v20  ;;  %7204 = vst [vmem:[#allocation19_spill] sm:$0xff] %v6275_v40  ;;  %v6278_v41 = vld [vmem:[%s6092_s9 + $0x22] sm:$0xff]  ;;  %v6303_v46 = vld [vmem:[%s6092_s9 + $0x3a] sm:$0xff]  ;;  %v6311_v48 = vld [vmem:[%s6092_s9 + $0x4a] sm:$0xff] }
  0x2b   : > { %5360 = vmatmul.mubr.msk.f32.gmra.mrb[6].mxu0 %vm209_vm1, %v6178_v21  ;;  %5162 = vmatprep.mubr.msk.f32.mxu1 %vm209_vm1, %v6181_v22  ;;  %v6300_v45 = vld [vmem:[%s6092_s9 + $0xe0] sm:$0xff]  ;;  %v6324_v49 = vld [vmem:[%s6092_s9 + $0xf8] sm:$0xff]  ;;  %v6330_v51 = vld [vmem:[%s6092_s9 + $0x108] sm:$0xff] }
  0x2c   : > { %5362 = vmatprep.mubr.msk.f32.mxu0 %vm209_vm1, %v6184_v23  ;;  %v6327_v50 = vld [vmem:[%s6092_s9 + $0x52] sm:$0xff]  ;;  %v6333_v52 = vld [vmem:[%s6092_s9 + $0x62] sm:$0xff]  ;;  %v6347_v54 = vld [vmem:[%s6092_s9 + $0x6a] sm:$0xff] }
  0x2d   : > { %v6344_v53 = vld [vmem:[%s6092_s9 + $0x110] sm:$0xff]  ;;  %v6350_v55 = vld [vmem:[%s6092_s9 + $0x120] sm:$0xff]  ;;  %v6364_v57 = vld [vmem:[%s6092_s9 + $0x128] sm:$0xff] }
  0x2e   : > { %5163 = vmatmul.mubr.msk.f32.gmra.mrb[8].mxu1 %vm209_vm1, %v6195_v24  ;;  %v6353_v56 = vld [vmem:[%s6092_s9 + $0x7a] sm:$0xff]  ;;  %v6367_v58 = vld [vmem:[%s6092_s9 + $0x82] sm:$0xff]  ;;  %v6373_v60 = vld [vmem:[%s6092_s9 + $0x92] sm:$0xff] }
  0x2f   : > { %5363 = vmatmul.mubr.msk.f32.gmra.mrb[8].mxu0 %vm209_vm1, %v6198_v25  ;;  %5165 = vmatprep.mubr.msk.f32.mxu1 %vm209_vm1, %v6201_v26  ;;  %v6370_v59 = vld [vmem:[%s6092_s9 + $0x138] sm:$0xff]  ;;  %7205 = vst [vmem:[#allocation20_spill] sm:$0xff] %v6373_v60  ;;  %v6384_v61 = vld [vmem:[%s6092_s9 + $0x140] sm:$0xff]  ;;  %v6390_v63 = vld [vmem:[%s6092_s9 + $0x150] sm:$0xff] }
  0x30   : > { %5365 = vmatprep.mubr.msk.f32.mxu0 %vm209_vm1, %v6204_v27  ;;  %v6387_v62 = vld [vmem:[%s6092_s9 + $0x9a] sm:$0xff]  ;;  %v6393_v0 = vld [vmem:[%s6092_s9 + $0xaa] sm:$0xff]  ;;  %v6407_v3 = vld [vmem:[%s6092_s9 + $0xb2] sm:$0xff] }
  0x31   : > { %7206 = vst [vmem:[#allocation21_spill] sm:$0xff] %v6387_v62  ;;  %7207 = vst [vmem:[#allocation22_spill] sm:$0xff] %v6393_v0  ;;  %v6404_v2 = vld [vmem:[%s6092_s9 + $0x158] sm:$0xff]  ;;  %v6410_v4 = vld [vmem:[%s6092_s9 + $0x168] sm:$0xff] }
  0x32   : > { %5166 = vmatmul.mubr.msk.f32.gmra.mrb[10].mxu1 %vm209_vm1, %v6215_v28  ;;  %7208 = vst [vmem:[#allocation23_spill] sm:$0xff] %v6404_v2  ;;  %7209 = vst [vmem:[#allocation24_spill] sm:$0xff] %v6407_v3  ;;  %v6413_v6 = vld [vmem:[%s6092_s9 + $0xc2] sm:$0xff]  ;;  %v6427_v12 = vld [vmem:[%s6092_s9 + $0xca] sm:$0xff] }
  0x33   : > { %5366 = vmatmul.mubr.msk.f32.gmra.mrb[10].mxu0 %vm209_vm1, %v6218_v29  ;;  %5168 = vmatprep.mubr.msk.f32.mxu1 %vm209_vm1, %v6221_v30  ;;  %7210 = vst [vmem:[#allocation25_spill] sm:$0xff] %v6410_v4  ;;  %7211 = vst [vmem:[#allocation26_spill] sm:$0xff] %v6413_v6  ;;  %v567_v8 = vld [vmem:[%s6092_s9 + $0x1] sm:$0xff] }
  0x34   : > { %5368 = vmatprep.mubr.msk.f32.mxu0 %vm209_vm1, %v6224_v31 }
  0x36   : > { %5169 = vmatmul.mubr.msk.f32.gmra.mrb[12].mxu1 %vm209_vm1, %v6235_v32 }
  0x37   : > { %5369 = vmatmul.mubr.msk.f32.gmra.mrb[12].mxu0 %vm209_vm1, %v6238_v33  ;;  %5171 = vmatprep.mubr.msk.f32.mxu1 %vm209_vm1, %v6241_v34 }
  0x38   : > { %5371 = vmatprep.mubr.msk.f32.mxu0 %vm209_vm1, %v6244_v35 }
  0x3a   : > { %5172 = vmatmul.mubr.msk.f32.gmra.mrb[14].mxu1 %vm209_vm1, %v6255_v36 }
  0x3b   : > { %5372 = vmatmul.mubr.msk.f32.gmra.mrb[14].mxu0 %vm209_vm1, %v6258_v37  ;;  %5174 = vmatprep.mubr.msk.f32.mxu1 %vm209_vm1, %v6261_v38 }
  0x3c   : > { %5400 = vmatprep.mubr.msk.f32.mxu0 %vm209_vm1, %v6264_v39 }
  0x3e   : > { %5175 = vmatmul.mubr.msk.f32.gmra.mrb[16].mxu1 %vm209_vm1, %v6275_v40 }
  0x3f   : > { %5401 = vmatmul.mubr.msk.f32.vlgmr.msra.gmra.mrb[0].mxu0 %vm209_vm1, %v6278_v41  ;;  %5177 = vmatprep.mubr.msk.f32.mxu1 %vm209_vm1, %v6281_v42 }
  0x40   : > { %5449 = vmatpush3.msk.msra.mxu0 %vm306_vm0, %v6117_v10  ;;  %5403 = vmatprep.mubr.msk.f32.mxu0 %vm209_vm1, %v6284_v43  ;;  %v6424_v10 = vld [vmem:[%s6092_s9 + $0x170] sm:$0xff] }
  0x41   : > { %5498 = vmatprep.subr.msk.mxu0 %vm306_vm0, %v6289_v44  ;;  %7212 = vst [vmem:[#allocation27_spill] sm:$0xff] %v6424_v10 }
  0x42   : > { %5178 = vmatmul.mubr.msk.f32.gmra.mrb[18].mxu1 %vm209_vm1, %v6300_v45 }
  0x43   : > { %5404 = vmatmul.mubr.msk.f32.gmra.mrb[2].mxu0 %vm209_vm1, %v6303_v46  ;;  %5180 = vmatprep.mubr.msk.f32.mxu1 %vm209_vm1, %v6308_v47 }
  0x44   : > { %5406 = vmatprep.mubr.msk.f32.mxu0 %vm209_vm1, %v6311_v48 }
  0x46   : > { %5181 = vmatmul.mubr.msk.f32.gmra.mrb[20].mxu1 %vm209_vm1, %v6324_v49 }
  0x47   : > { %5407 = vmatmul.mubr.msk.f32.gmra.mrb[4].mxu0 %vm209_vm1, %v6327_v50  ;;  %5183 = vmatprep.mubr.msk.f32.mxu1 %vm209_vm1, %v6330_v51 }
  0x48   : > { %5409 = vmatprep.mubr.msk.f32.mxu0 %vm209_vm1, %v6333_v52 }
  0x4a   : > { %5184 = vmatmul.mubr.msk.f32.gmra.mrb[22].mxu1 %vm209_vm1, %v6344_v53 }
  0x4b   : > { %5410 = vmatmul.mubr.msk.f32.gmra.mrb[6].mxu0 %vm209_vm1, %v6347_v54  ;;  %5186 = vmatprep.mubr.msk.f32.mxu1 %vm209_vm1, %v6350_v55 }
  0x4c   : > { %5412 = vmatprep.mubr.msk.f32.mxu0 %vm209_vm1, %v6353_v56 }
  0x4e   : > { %5187 = vmatmul.mubr.msk.f32.gmra.mrb[24].mxu1 %vm209_vm1, %v6364_v57 }
  0x4f   : > { %5413 = vmatmul.mubr.msk.f32.gmra.mrb[8].mxu0 %vm209_vm1, %v6367_v58  ;;  %5189 = vmatprep.mubr.msk.f32.mxu1 %vm209_vm1, %v6370_v59 }
  0x50   : > { %5415 = vmatprep.mubr.msk.f32.mxu0 %vm209_vm1, %v6373_v60  ;;  %v6450_v60 = vld [vmem:[%s7136_s1 + $0xc] sm:$0xf] }
  0x52   : > { %5190 = vmatmul.mubr.msk.f32.gmra.mrb[26].mxu1 %vm209_vm1, %v6384_v61 }
  0x53   : > { %5416 = vmatmul.mubr.msk.f32.gmra.mrb[10].mxu0 %vm209_vm1, %v6387_v62  ;;  %5192 = vmatprep.mubr.msk.f32.mxu1 %vm209_vm1, %v6390_v63  ;;  %v6445_v62 = vld [vmem:[%s6092_s9 + $0xf2] sm:$0xff] }
  0x54   : > { %5418 = vmatprep.mubr.msk.f32.mxu0 %vm209_vm1, %v6393_v0  ;;  %v6431_v0 = vld [vmem:[%s6092_s9 + $0xda] sm:$0xff] }
  0x55   : > { %7213 = vst [vmem:[#allocation28_spill] sm:$0xff] %v6431_v0 }
  0x56   : > { %5193 = vmatmul.mubr.msk.f32.gmra.mrb[28].mxu1 %vm209_vm1, %v6404_v2 }
  0x57   : > { %5419 = vmatmul.mubr.msk.f32.gmra.mrb[12].mxu0 %vm209_vm1, %v6407_v3  ;;  %5195 = vmatprep.mubr.msk.f32.mxu1 %vm209_vm1, %v6410_v4  ;;  %v6442_v3 = vld [vmem:[%s6092_s9 + $0xe2] sm:$0xff] }
  0x58   : > { %5421 = vmatprep.mubr.msk.f32.mxu0 %vm209_vm1, %v6413_v6  ;;  %v568_v6 = vld [vmem:[%s6092_s9 + $0x9] sm:$0xff] }
  0x5a   : > { %5196 = vmatmul.mubr.msk.f32.gmra.mrb[30].mxu1 %vm209_vm1, %v6424_v10 }
  0x5b   : > { %5422 = vmatmul.mubr.msk.f32.gmra.mrb[14].mxu0 %vm209_vm1, %v6427_v12  ;;  %5200 = vmatprep.mubr.msk.f32.mxu1 %vm209_vm1, %v567_v8  ;;  %v6460_v8 = vld [vmem:[%s6092_s9 + $0xfa] sm:$0xff] }
  0x5c   : > { %5424 = vmatprep.mubr.msk.f32.mxu0 %vm209_vm1, %v6431_v0  ;;  %v6465_v0 = vld [vmem:[%s6092_s9 + $0x10a] sm:$0xff] }
  0x5e   : > { %5201 = vmatmul.mubr.msk.f32.vlgmr.msra.gmra.mrb[0].mxu1 %vm209_vm1, %v568_v6  ;;  %v6495_v6 = vld [vmem:[%s6092_s9 + $0x13a] sm:$0xff] }
  0x5f   : > { %5425 = vmatmul.mubr.msk.f32.gmra.mrb[16].mxu0 %vm209_vm1, %v6442_v3  ;;  %5249 = vmatpush3.msk.msra.mxu1 %vm306_vm0, %v6122_v11  ;;  %v6481_v11 = vld [vmem:[%s6092_s9 + $0x122] sm:$0xff]  ;;  %7217 = vst [vmem:[#allocation32_spill] sm:$0xff] %v6495_v6 }
  0x60   : > { %5203 = vmatprep.mubr.msk.f32.mxu1 %vm209_vm1, %v6096_v5  ;;  %5427 = vmatprep.mubr.msk.f32.mxu0 %vm209_vm1, %v6445_v62  ;;  %v6478_v5 = vld [vmem:[%s6092_s9 + $0x112] sm:$0xff]  ;;  %7215 = vst [vmem:[#allocation30_spill] sm:$0xff] %v6481_v11 }
  0x61   : > { %5298 = vmatprep.subr.msk.mxu1 %vm306_vm0, %v6450_v60  ;;  %7214 = vst [vmem:[#allocation29_spill] sm:$0xff] %v6478_v5 }
  0x62   : > { %5204 = vmatmul.mubr.msk.f32.gmra.mrb[2].mxu1 %vm209_vm1, %v6103_v7  ;;  %v6492_v7 = vld [vmem:[%s6092_s9 + $0x12a] sm:$0xff] }
  0x63   : > { %5428 = vmatmul.mubr.msk.f32.gmra.mrb[18].mxu0 %vm209_vm1, %v6460_v8  ;;  %5206 = vmatprep.mubr.msk.f32.mxu1 %vm209_vm1, %v6109_v9  ;;  %7216 = vst [vmem:[#allocation31_spill] sm:$0xff] %v6492_v7 }
  0x64   : > { %5430 = vmatprep.mubr.msk.f32.mxu0 %vm209_vm1, %v6465_v0 }
  0x66   : > { %5207 = vmatmul.mubr.msk.f32.gmra.mrb[4].mxu1 %vm209_vm1, %v6130_v13 }
  0x67   : > { %5431 = vmatmul.mubr.msk.f32.gmra.mrb[20].mxu0 %vm209_vm1, %v6478_v5  ;;  %5209 = vmatprep.mubr.msk.f32.mxu1 %vm209_vm1, %v6140_v15  ;;  %v6506_v5 = vld [vmem:[%s6092_s9 + $0x142] sm:$0xff] }
  0x68   : > { %5433 = vmatprep.mubr.msk.f32.mxu0 %vm209_vm1, %v6481_v11  ;;  %7218 = vst [vmem:[#allocation33_spill] sm:$0xff] %v6506_v5  ;;  %v6509_v11 = vld [vmem:[%s6092_s9 + $0x152] sm:$0xff] }
  0x69   : > { %7219 = vst [vmem:[#allocation34_spill] sm:$0xff] %v6509_v11 }
  0x6a   : > { %5210 = vmatmul.mubr.msk.f32.gmra.mrb[6].mxu1 %vm209_vm1, %v6158_v17 }
  0x6b   : > { %5434 = vmatmul.mubr.msk.f32.gmra.mrb[22].mxu0 %vm209_vm1, %v6492_v7  ;;  %5212 = vmatprep.mubr.msk.f32.mxu1 %vm209_vm1, %v6164_v19  ;;  %v6520_v7 = vld [vmem:[%s6092_s9 + $0x15a] sm:$0xff] }
  0x6c   : > { %5436 = vmatprep.mubr.msk.f32.mxu0 %vm209_vm1, %v6495_v6  ;;  %7220 = vst [vmem:[#allocation35_spill] sm:$0xff] %v6520_v7  ;;  %v6523_v6 = vld [vmem:[%s6092_s9 + $0x16a] sm:$0xff] }
  0x6e   : > { %5213 = vmatmul.mubr.msk.f32.gmra.mrb[8].mxu1 %vm209_vm1, %v6178_v21 }
  0x6f   : > { %5437 = vmatmul.mubr.msk.f32.gmra.mrb[24].mxu0 %vm209_vm1, %v6506_v5  ;;  %5215 = vmatprep.mubr.msk.f32.mxu1 %vm209_vm1, %v6184_v23  ;;  %v6534_v5 = vld [vmem:[%s6092_s9 + $0x172] sm:$0xff] }
  0x70   : > { %5439 = vmatprep.mubr.msk.f32.mxu0 %vm209_vm1, %v6509_v11  ;;  %7221 = vst [vmem:[#allocation36_spill] sm:$0xff] %v6534_v5  ;;  %v6537_v11 = vld [vmem:[%s6092_s9 + $0x182] sm:$0xff] }
  0x71   : > { %7222 = vst [vmem:[#allocation37_spill] sm:$0xff] %v6537_v11 }
  0x72   : > { %5216 = vmatmul.mubr.msk.f32.gmra.mrb[10].mxu1 %vm209_vm1, %v6198_v25 }
  0x73   : > { %5440 = vmatmul.mubr.msk.f32.gmra.mrb[26].mxu0 %vm209_vm1, %v6520_v7  ;;  %5218 = vmatprep.mubr.msk.f32.mxu1 %vm209_vm1, %v6204_v27  ;;  %v6548_v7 = vld [vmem:[%s6092_s9 + $0x18a] sm:$0xff] }
  0x74   : > { %5442 = vmatprep.mubr.msk.f32.mxu0 %vm209_vm1, %v6523_v6  ;;  %7223 = vst [vmem:[#allocation38_spill] sm:$0xff] %v6548_v7 }
  0x76   : > { %5219 = vmatmul.mubr.msk.f32.gmra.mrb[12].mxu1 %vm209_vm1, %v6218_v29 }
  0x77   : > { %5443 = vmatmul.mubr.msk.f32.gmra.mrb[28].mxu0 %vm209_vm1, %v6534_v5  ;;  %5221 = vmatprep.mubr.msk.f32.mxu1 %vm209_vm1, %v6224_v31  ;;  %v6559_v5 = vld [vmem:[%s6092_s9 + $0xd9] sm:$0xff] }
  0x78   : > { %5445 = vmatprep.mubr.msk.f32.mxu0 %vm209_vm1, %v6537_v11  ;;  %v6564_v11 = vld [vmem:[%s7136_s1 + $0x20] sm:$0xf] }
  0x7a   : > { %5222 = vmatmul.mubr.msk.f32.gmra.mrb[14].mxu1 %vm209_vm1, %v6238_v33 }
  0x7b   : > { %5446 = vmatmul.mubr.msk.f32.gmra.mrb[30].mxu0 %vm209_vm1, %v6548_v7  ;;  %5224 = vmatprep.mubr.msk.f32.mxu1 %vm209_vm1, %v6244_v35  ;;  %v6575_v7 = vld [vmem:[%s6092_s9 + $0xe1] sm:$0xff] }
  0x7c   : > { %5450 = vmatprep.mubr.msk.f32.mxu0 %vm209_vm1, %v6137_v14  ;;  %v6580_v14 = vld [vmem:[%s6092_s9 + $0xf1] sm:$0xff] }
  0x7e   : > { %5225 = vmatmul.mubr.msk.f32.gmra.mrb[16].mxu1 %vm209_vm1, %v6258_v37 }
  0x7f   : > { %5451 = vmatmul.mubr.msk.f32.vlgmr.msra.gmra.mrb[0].mxu0 %vm209_vm1, %v6155_v16  ;;  %5227 = vmatprep.mubr.msk.f32.mxu1 %vm209_vm1, %v6559_v5 }
  0x80   : > { %5499 = vmatpush3.msk.msra.mxu0 %vm306_vm0, %v6289_v44  ;;  %5453 = vmatprep.mubr.msk.f32.mxu0 %vm209_vm1, %v6161_v18  ;;  %v6593_v44 = vld [vmem:[%s6092_s9 + $0xf9] sm:$0xff]  ;;  %v6596_v18 = vld [vmem:[%s6092_s9 + $0x109] sm:$0xff] }
  0x81   : > { %5548 = vmatprep.subr.msk.mxu0 %vm306_vm0, %v6564_v11 }
  0x82   : > { %5228 = vmatmul.mubr.msk.f32.gmra.mrb[18].mxu1 %vm209_vm1, %v6575_v7 }
  0x83   : > { %5454 = vmatmul.mubr.msk.f32.gmra.mrb[2].mxu0 %vm209_vm1, %v6175_v20  ;;  %5230 = vmatprep.mubr.msk.f32.mxu1 %vm209_vm1, %v6580_v14  ;;  %v6607_v20 = vld [vmem:[%s6092_s9 + $0x111] sm:$0xff] }
  0x84   : > { %5456 = vmatprep.mubr.msk.f32.mxu0 %vm209_vm1, %v6181_v22  ;;  %v6610_v22 = vld [vmem:[%s6092_s9 + $0x121] sm:$0xff] }
  0x86   : > { %5231 = vmatmul.mubr.msk.f32.gmra.mrb[20].mxu1 %vm209_vm1, %v6593_v44 }
  0x87   : > { %5457 = vmatmul.mubr.msk.f32.gmra.mrb[4].mxu0 %vm209_vm1, %v6195_v24  ;;  %5233 = vmatprep.mubr.msk.f32.mxu1 %vm209_vm1, %v6596_v18  ;;  %v6621_v24 = vld [vmem:[%s6092_s9 + $0x129] sm:$0xff] }
  0x88   : > { %5459 = vmatprep.mubr.msk.f32.mxu0 %vm209_vm1, %v6201_v26  ;;  %v6624_v26 = vld [vmem:[%s6092_s9 + $0x139] sm:$0xff] }
  0x8a   : > { %5234 = vmatmul.mubr.msk.f32.gmra.mrb[22].mxu1 %vm209_vm1, %v6607_v20 }
  0x8b   : > { %5460 = vmatmul.mubr.msk.f32.gmra.mrb[6].mxu0 %vm209_vm1, %v6215_v28  ;;  %5236 = vmatprep.mubr.msk.f32.mxu1 %vm209_vm1, %v6610_v22  ;;  %v6635_v28 = vld [vmem:[%s6092_s9 + $0x141] sm:$0xff] }
  0x8c   : > { %5462 = vmatprep.mubr.msk.f32.mxu0 %vm209_vm1, %v6221_v30  ;;  %v6638_v30 = vld [vmem:[%s6092_s9 + $0x151] sm:$0xff] }
  0x8d   : > { %7224 = vst [vmem:[#allocation39_spill] sm:$0xff] %v6638_v30 }
  0x8e   : > { %5237 = vmatmul.mubr.msk.f32.gmra.mrb[24].mxu1 %vm209_vm1, %v6621_v24 }
  0x8f   : > { %5463 = vmatmul.mubr.msk.f32.gmra.mrb[8].mxu0 %vm209_vm1, %v6235_v32  ;;  %5239 = vmatprep.mubr.msk.f32.mxu1 %vm209_vm1, %v6624_v26  ;;  %v6649_v32 = vld [vmem:[%s6092_s9 + $0x159] sm:$0xff] }
  0x90   : > { %5465 = vmatprep.mubr.msk.f32.mxu0 %vm209_vm1, %v6241_v34  ;;  %v6652_v34 = vld [vmem:[%s6092_s9 + $0x169] sm:$0xff] }
  0x92   : > { %5240 = vmatmul.mubr.msk.f32.gmra.mrb[26].mxu1 %vm209_vm1, %v6635_v28 }
  0x93   : > { %5466 = vmatmul.mubr.msk.f32.gmra.mrb[10].mxu0 %vm209_vm1, %v6255_v36  ;;  %5242 = vmatprep.mubr.msk.f32.mxu1 %vm209_vm1, %v6638_v30  ;;  %v6663_v36 = vld [vmem:[%s6092_s9 + $0x171] sm:$0xff]  ;;  %v1021_v30 = vld [vmem:[%s6092_s9 + $0x2] sm:$0xff] }
  0x94   : > { %5468 = vmatprep.mubr.msk.f32.mxu0 %vm209_vm1, %v6261_v38 }
  0x96   : > { %5243 = vmatmul.mubr.msk.f32.gmra.mrb[28].mxu1 %vm209_vm1, %v6649_v32 }
  0x97   : > { %5469 = vmatmul.mubr.msk.f32.gmra.mrb[12].mxu0 %vm209_vm1, %v6275_v40  ;;  %5245 = vmatprep.mubr.msk.f32.mxu1 %vm209_vm1, %v6652_v34  ;;  %v1022_v40 = vld [vmem:[%s6092_s9 + $0xa] sm:$0xff] }
  0x98   : > { %5471 = vmatprep.mubr.msk.f32.mxu0 %vm209_vm1, %v6281_v42 }
  0x9a   : > { %5246 = vmatmul.mubr.msk.f32.gmra.mrb[30].mxu1 %vm209_vm1, %v6663_v36 }
  0x9b   : > { %5472 = vmatmul.mubr.msk.f32.gmra.mrb[14].mxu0 %vm209_vm1, %v6300_v45  ;;  %5250 = vmatprep.mubr.msk.f32.mxu1 %vm209_vm1, %v1021_v30  ;;  %v6718_v30 = vld [vmem:[%s6092_s9 + $0x180] sm:$0xff] }
  0x9c   : > { %5474 = vmatprep.mubr.msk.f32.mxu0 %vm209_vm1, %v6308_v47  ;;  %7225 = vst [vmem:[#allocation40_spill] sm:$0xff] %v6718_v30 }
  0x9e   : > { %5251 = vmatmul.mubr.msk.f32.vlgmr.msra.gmra.mrb[0].mxu1 %vm209_vm1, %v1022_v40  ;;  %v6729_v40 = vld [vmem:[%s6092_s9 + $0x188] sm:$0xff] }
  0x9f   : > { %5475 = vmatmul.mubr.msk.f32.gmra.mrb[16].mxu0 %vm209_vm1, %v6324_v49  ;;  %5299 = vmatpush3.msk.msra.mxu1 %vm306_vm0, %v6450_v60  ;;  %v7227_v60 = vld [vmem:[#allocation21_spill] sm:$0xff] }
  0xa0   : > { %5253 = vmatprep.mubr.msk.f32.mxu1 %vm209_vm1, %v6264_v39  ;;  %5477 = vmatprep.mubr.msk.f32.mxu0 %vm209_vm1, %v6330_v51  ;;  %v7226_v39 = vld [vmem:[#allocation20_spill] sm:$0xff] }
  0xa1   : > { %5598 = vmatprep.subr.msk.mxu1 %vm306_vm0, %v6071_v1 }
  0xa2   : > { %5254 = vmatmul.mubr.msk.f32.gmra.mrb[2].mxu1 %vm209_vm1, %v6278_v41  ;;  %v4677_v41 = vld [vmem:[%s6092_s9 + $0x198] sm:$0xff] }
  0xa3   : > { %5478 = vmatmul.mubr.msk.f32.gmra.mrb[18].mxu0 %vm209_vm1, %v6344_v53  ;;  %5256 = vmatprep.mubr.msk.f32.mxu1 %vm209_vm1, %v6284_v43 }
  0xa4   : > { %5480 = vmatprep.mubr.msk.f32.mxu0 %vm209_vm1, %v6350_v55 }
  0xa6   : > { %5257 = vmatmul.mubr.msk.f32.gmra.mrb[4].mxu1 %vm209_vm1, %v6303_v46 }
  0xa7   : > { %5481 = vmatmul.mubr.msk.f32.gmra.mrb[20].mxu0 %vm209_vm1, %v6364_v57  ;;  %5259 = vmatprep.mubr.msk.f32.mxu1 %vm209_vm1, %v6311_v48 }
  0xa8   : > { %5483 = vmatprep.mubr.msk.f32.mxu0 %vm209_vm1, %v6370_v59 }
  0xaa   : > { %5260 = vmatmul.mubr.msk.f32.gmra.mrb[6].mxu1 %vm209_vm1, %v6327_v50 }
  0xab   : > { %5484 = vmatmul.mubr.msk.f32.gmra.mrb[22].mxu0 %vm209_vm1, %v6384_v61  ;;  %5262 = vmatprep.mubr.msk.f32.mxu1 %vm209_vm1, %v6333_v52 }
  0xac   : > { %5486 = vmatprep.mubr.msk.f32.mxu0 %vm209_vm1, %v6390_v63 }
  0xae   : > { %5263 = vmatmul.mubr.msk.f32.gmra.mrb[8].mxu1 %vm209_vm1, %v6347_v54 }
  0xaf   : > { %5487 = vmatmul.mubr.msk.f32.gmra.mrb[24].mxu0 %vm209_vm1, %v6404_v2  ;;  %5265 = vmatprep.mubr.msk.f32.mxu1 %vm209_vm1, %v6353_v56  ;;  %v7229_v2 = vld [vmem:[#allocation24_spill] sm:$0xff] }
  0xb0   : > { %5489 = vmatprep.mubr.msk.f32.mxu0 %vm209_vm1, %v6410_v4  ;;  %v7228_v4 = vld [vmem:[#allocation22_spill] sm:$0xff] }
  0xb2   : > { %5266 = vmatmul.mubr.msk.f32.gmra.mrb[10].mxu1 %vm209_vm1, %v6367_v58 }
  0xb3   : > { %5490 = vmatmul.mubr.msk.f32.gmra.mrb[26].mxu0 %vm209_vm1, %v6424_v10  ;;  %5268 = vmatprep.mubr.msk.f32.mxu1 %vm209_vm1, %v7226_v39  ;;  %v4678_v10 = vld [vmem:[%s6092_s9 + $0x1a0] sm:$0xff] }
  0xb4   : > { %5492 = vmatprep.mubr.msk.f32.mxu0 %vm209_vm1, %v6718_v30  ;;  %v7230_v30 = vld [vmem:[#allocation26_spill] sm:$0xff] }
  0xb6   : > { %5269 = vmatmul.mubr.msk.f32.gmra.mrb[12].mxu1 %vm209_vm1, %v7227_v60 }
  0xb7   : > { %5493 = vmatmul.mubr.msk.f32.gmra.mrb[28].mxu0 %vm209_vm1, %v6729_v40  ;;  %5271 = vmatprep.mubr.msk.f32.mxu1 %vm209_vm1, %v7228_v4 }
  0xb8   : > { %5495 = vmatprep.mubr.msk.f32.mxu0 %vm209_vm1, %v4677_v41  ;;  %v7231_v41 = vld [vmem:[#allocation28_spill] sm:$0xff] }
  0xba   : > { %5272 = vmatmul.mubr.msk.f32.gmra.mrb[14].mxu1 %vm209_vm1, %v7229_v2 }
  0xbb   : > { %5496 = vmatmul.mubr.msk.f32.gmra.mrb[30].mxu0 %vm209_vm1, %v4678_v10  ;;  %5274 = vmatprep.mubr.msk.f32.mxu1 %vm209_vm1, %v7230_v30  ;;  %v7248_v10 = vld [vmem:[#allocation39_spill] sm:$0xff] }
  0xbc   : > { %5500 = vmatprep.mubr.msk.f32.mxu0 %vm209_vm1, %v6109_v9  ;;  %v7232_v9 = vld [vmem:[#allocation29_spill] sm:$0xff] }
  0xbe   : > { %5275 = vmatmul.mubr.msk.f32.gmra.mrb[16].mxu1 %vm209_vm1, %v6427_v12 }
  0xbf   : > { %5501 = vmatmul.mubr.msk.f32.vlgmr.msra.gmra.mrb[0].mxu0 %vm209_vm1, %v6130_v13  ;;  %5277 = vmatprep.mubr.msk.f32.mxu1 %vm209_vm1, %v7231_v41  ;;  %v7233_v13 = vld [vmem:[#allocation30_spill] sm:$0xff] }
  0xc0   : > { %5549 = vmatpush3.msk.msra.mxu0 %vm306_vm0, %v6564_v11  ;;  %5503 = vmatprep.mubr.msk.f32.mxu0 %vm209_vm1, %v6140_v15  ;;  %v7234_v15 = vld [vmem:[#allocation31_spill] sm:$0xff]  ;;  %v7249_v11 = vld [vmem:[#allocation14_spill] sm:$0xff] }
  0xc2   : > { %5278 = vmatmul.mubr.msk.f32.gmra.mrb[18].mxu1 %vm209_vm1, %v6442_v3 }
  0xc3   : > { %5504 = vmatmul.mubr.msk.f32.gmra.mrb[2].mxu0 %vm209_vm1, %v6158_v17  ;;  %5280 = vmatprep.mubr.msk.f32.mxu1 %vm209_vm1, %v6445_v62  ;;  %v7235_v17 = vld [vmem:[#allocation32_spill] sm:$0xff] }
  0xc4   : > { %5506 = vmatprep.mubr.msk.f32.mxu0 %vm209_vm1, %v6164_v19  ;;  %v7236_v19 = vld [vmem:[#allocation33_spill] sm:$0xff] }
  0xc6   : > { %5281 = vmatmul.mubr.msk.f32.gmra.mrb[20].mxu1 %vm209_vm1, %v6460_v8 }
  0xc7   : > { %5507 = vmatmul.mubr.msk.f32.gmra.mrb[4].mxu0 %vm209_vm1, %v6178_v21  ;;  %5283 = vmatprep.mubr.msk.f32.mxu1 %vm209_vm1, %v6465_v0  ;;  %v7237_v21 = vld [vmem:[#allocation34_spill] sm:$0xff] }
  0xc8   : > { %5509 = vmatprep.mubr.msk.f32.mxu0 %vm209_vm1, %v6184_v23  ;;  %v7238_v23 = vld [vmem:[#allocation35_spill] sm:$0xff] }
  0xca   : > { %5284 = vmatmul.mubr.msk.f32.gmra.mrb[22].mxu1 %vm209_vm1, %v7232_v9 }
  0xcb   : > { %5510 = vmatmul.mubr.msk.f32.gmra.mrb[6].mxu0 %vm209_vm1, %v6198_v25  ;;  %5286 = vmatprep.mubr.msk.f32.mxu1 %vm209_vm1, %v7233_v13  ;;  %v7239_v25 = vld [vmem:[#allocation36_spill] sm:$0xff] }
  0xcc   : > { %5512 = vmatprep.mubr.msk.f32.mxu0 %vm209_vm1, %v6204_v27  ;;  %v7240_v27 = vld [vmem:[#allocation6_spill] sm:$0xff] }
  0xce   : > { %5287 = vmatmul.mubr.msk.f32.gmra.mrb[24].mxu1 %vm209_vm1, %v7234_v15 }
  0xcf   : > { %5513 = vmatmul.mubr.msk.f32.gmra.mrb[8].mxu0 %vm209_vm1, %v6218_v29  ;;  %5289 = vmatprep.mubr.msk.f32.mxu1 %vm209_vm1, %v7235_v17  ;;  %v7241_v29 = vld [vmem:[#allocation7_spill] sm:$0xff] }
  0xd0   : > { %5515 = vmatprep.mubr.msk.f32.mxu0 %vm209_vm1, %v6224_v31  ;;  %v7242_v31 = vld [vmem:[#allocation8_spill] sm:$0xff] }
  0xd2   : > { %5290 = vmatmul.mubr.msk.f32.gmra.mrb[26].mxu1 %vm209_vm1, %v7236_v19 }
  0xd3   : > { %5516 = vmatmul.mubr.msk.f32.gmra.mrb[10].mxu0 %vm209_vm1, %v6238_v33  ;;  %5292 = vmatprep.mubr.msk.f32.mxu1 %vm209_vm1, %v7237_v21  ;;  %v7243_v33 = vld [vmem:[#allocation9_spill] sm:$0xff] }
  0xd4   : > { %5518 = vmatprep.mubr.msk.f32.mxu0 %vm209_vm1, %v6244_v35  ;;  %v7245_v35 = vld [vmem:[#allocation11_spill] sm:$0xff] }
  0xd6   : > { %5293 = vmatmul.mubr.msk.f32.gmra.mrb[28].mxu1 %vm209_vm1, %v7238_v23 }
  0xd7   : > { %5519 = vmatmul.mubr.msk.f32.gmra.mrb[12].mxu0 %vm209_vm1, %v6258_v37  ;;  %5295 = vmatprep.mubr.msk.f32.mxu1 %vm209_vm1, %v6523_v6  ;;  %v7247_v37 = vld [vmem:[#allocation13_spill] sm:$0xff] }
  0xd8   : > { %5521 = vmatprep.mubr.msk.f32.mxu0 %vm209_vm1, %v6559_v5 }
  0xda   : > { %5296 = vmatmul.mubr.msk.f32.gmra.mrb[30].mxu1 %vm209_vm1, %v7239_v25 }
  0xdb   : > { %5522 = vmatmul.mubr.msk.f32.gmra.mrb[14].mxu0 %vm209_vm1, %v6575_v7  ;;  %5300 = vmatprep.mubr.msk.f32.mxu1 %vm209_vm1, %v7240_v27  ;;  %v7250_v27 = vld [vmem:[#allocation15_spill] sm:$0xff] }
  0xdc   : > { %5524 = vmatprep.mubr.msk.f32.mxu0 %vm209_vm1, %v6580_v14 }
  0xde   : > { %5301 = vmatmul.mubr.msk.f32.vlgmr.msra.gmra.mrb[0].mxu1 %vm209_vm1, %v7241_v29  ;;  %v6856_v29 = vld [vmem:[%s6092_s9 + $0x181] sm:$0xff] }
  0xdf   : > { %5525 = vmatmul.mubr.msk.f32.gmra.mrb[16].mxu0 %vm209_vm1, %v6593_v44  ;;  %5599 = vmatpush3.msk.msra.mxu1 %vm306_vm0, %v6071_v1  ;;  %v7244_v1 = vld [vmem:[#allocation10_spill] sm:$0xff] }
  0xe0   : > { %5303 = vmatprep.mubr.msk.f32.mxu1 %vm209_vm1, %v7242_v31  ;;  %5527 = vmatprep.mubr.msk.f32.mxu0 %vm209_vm1, %v6596_v18  ;;  %v7251_v31 = vld [vmem:[#allocation16_spill] sm:$0xff] }
  0xe2   : > { %5304 = vmatmul.mubr.msk.f32.gmra.mrb[2].mxu1 %vm209_vm1, %v6155_v16  ;;  %v7246_v16 = vld [vmem:[#allocation12_spill] sm:$0xff] }
  0xe3   : > { %5528 = vmatmul.mubr.msk.f32.gmra.mrb[18].mxu0 %vm209_vm1, %v6607_v20  ;;  %5306 = vmatprep.mubr.msk.f32.mxu1 %vm209_vm1, %v7243_v33  ;;  %v7252_v33 = vld [vmem:[#allocation17_spill] sm:$0xff] }
  0xe4   : > { %5530 = vmatprep.mubr.msk.f32.mxu0 %vm209_vm1, %v6610_v22 }
  0xe6   : > { %5307 = vmatmul.mubr.msk.f32.gmra.mrb[4].mxu1 %vm209_vm1, %v7244_v1  ;;  %v6867_v1 = vld [vmem:[%s6092_s9 + $0x189] sm:$0xff] }
  0xe7   : > { %5531 = vmatmul.mubr.msk.f32.gmra.mrb[20].mxu0 %vm209_vm1, %v6621_v24  ;;  %5309 = vmatprep.mubr.msk.f32.mxu1 %vm209_vm1, %v7245_v35  ;;  %v4743_v35 = vld [vmem:[%s6092_s9 + $0x199] sm:$0xff] }
  0xe8   : > { %5533 = vmatprep.mubr.msk.f32.mxu0 %vm209_vm1, %v6624_v26 }
  0xea   : > { %5310 = vmatmul.mubr.msk.f32.gmra.mrb[6].mxu1 %vm209_vm1, %v7246_v16  ;;  %v7253_v16 = vld [vmem:[#allocation18_spill] sm:$0xff] }
  0xeb   : > { %5534 = vmatmul.mubr.msk.f32.gmra.mrb[22].mxu0 %vm209_vm1, %v6635_v28  ;;  %5312 = vmatprep.mubr.msk.f32.mxu1 %vm209_vm1, %v7247_v37  ;;  %v4744_v37 = vld [vmem:[%s6092_s9 + $0x1a1] sm:$0xff] }
  0xec   : > { %5536 = vmatprep.mubr.msk.f32.mxu0 %vm209_vm1, %v7248_v10 }
  0xee   : > { %5313 = vmatmul.mubr.msk.f32.gmra.mrb[8].mxu1 %vm209_vm1, %v7249_v11  ;;  %v7254_v11 = vld [vmem:[#allocation19_spill] sm:$0xff] }
  0xef   : > { %5537 = vmatmul.mubr.msk.f32.gmra.mrb[24].mxu0 %vm209_vm1, %v6649_v32  ;;  %5315 = vmatprep.mubr.msk.f32.mxu1 %vm209_vm1, %v7250_v27 }
  0xf0   : > { %5539 = vmatprep.mubr.msk.f32.mxu0 %vm209_vm1, %v6652_v34 }
  0xf2   : > { %5316 = vmatmul.mubr.msk.f32.gmra.mrb[10].mxu1 %vm209_vm1, %v7251_v31 }
  0xf3   : > { %5540 = vmatmul.mubr.msk.f32.gmra.mrb[26].mxu0 %vm209_vm1, %v6663_v36  ;;  %5318 = vmatprep.mubr.msk.f32.mxu1 %vm209_vm1, %v7252_v33 }
  0xf4   : > { %5542 = vmatprep.mubr.msk.f32.mxu0 %vm209_vm1, %v6856_v29 }
  0xf6   : > { %5319 = vmatmul.mubr.msk.f32.gmra.mrb[12].mxu1 %vm209_vm1, %v7253_v16 }
  0xf7   : > { %5543 = vmatmul.mubr.msk.f32.gmra.mrb[28].mxu0 %vm209_vm1, %v6867_v1  ;;  %5321 = vmatprep.mubr.msk.f32.mxu1 %vm209_vm1, %v6261_v38  ;;  %v7255_v38 = vld [vmem:[#allocation23_spill] sm:$0xff] }
  0xf8   : > { %5545 = vmatprep.mubr.msk.f32.mxu0 %vm209_vm1, %v4743_v35 }
  0xfa   : > { %5322 = vmatmul.mubr.msk.f32.gmra.mrb[14].mxu1 %vm209_vm1, %v7254_v11 }
  0xfb   : > { %5546 = vmatmul.mubr.msk.f32.gmra.mrb[30].mxu0 %vm209_vm1, %v4744_v37  ;;  %5324 = vmatprep.mubr.msk.f32.mxu1 %vm209_vm1, %v6281_v42  ;;  %v7256_v42 = vld [vmem:[#allocation25_spill] sm:$0xff] }
  0xfc   : > { %5550 = vmatprep.mubr.msk.f32.mxu0 %vm209_vm1, %v6284_v43  ;;  %v7257_v43 = vld [vmem:[#allocation27_spill] sm:$0xff] }
  0xfe   : > { %5325 = vmatmul.mubr.msk.f32.gmra.mrb[16].mxu1 %vm209_vm1, %v6300_v45  ;;  %v7258_v45 = vld [vmem:[#allocation40_spill] sm:$0xff] }
  0xff   : > { %5551 = vmatmul.mubr.msk.f32.vlgmr.msra.gmra.mrb[0].mxu0 %vm209_vm1, %v6303_v46  ;;  %5327 = vmatprep.mubr.msk.f32.mxu1 %vm209_vm1, %v6308_v47 }
 0x100   : > { %5553 = vmatprep.mubr.msk.f32.mxu0 %vm209_vm1, %v6311_v48 }
 0x102   : > { %5328 = vmatmul.mubr.msk.f32.gmra.mrb[18].mxu1 %vm209_vm1, %v6324_v49 }
 0x103   : > { %5554 = vmatmul.mubr.msk.f32.gmra.mrb[2].mxu0 %vm209_vm1, %v6327_v50  ;;  %5330 = vmatprep.mubr.msk.f32.mxu1 %vm209_vm1, %v6330_v51 }
 0x104   : > { %5556 = vmatprep.mubr.msk.f32.mxu0 %vm209_vm1, %v6333_v52 }
 0x106   : > { %5331 = vmatmul.mubr.msk.f32.gmra.mrb[20].mxu1 %vm209_vm1, %v6344_v53  ;;  %v7013_v53 = vld [vmem:[%s7137_s2] ss:$0 sm:$0xff] }
 0x107   : > { %5557 = vmatmul.mubr.msk.f32.gmra.mrb[4].mxu0 %vm209_vm1, %v6347_v54  ;;  %5333 = vmatprep.mubr.msk.f32.mxu1 %vm209_vm1, %v6350_v55 }
 0x108   : > { %5559 = vmatprep.mubr.msk.f32.mxu0 %vm209_vm1, %v6353_v56 }
 0x10a   : > { %5334 = vmatmul.mubr.msk.f32.gmra.mrb[22].mxu1 %vm209_vm1, %v6364_v57 }
 0x10b   : > { %5560 = vmatmul.mubr.msk.f32.gmra.mrb[6].mxu0 %vm209_vm1, %v6367_v58  ;;  %5336 = vmatprep.mubr.msk.f32.mxu1 %vm209_vm1, %v6370_v59 }
 0x10c   : > { %5562 = vmatprep.mubr.msk.f32.mxu0 %vm209_vm1, %v7226_v39 }
 0x10e   : > { %5337 = vmatmul.mubr.msk.f32.gmra.mrb[24].mxu1 %vm209_vm1, %v6384_v61 }
 0x10f   : > { %5563 = vmatmul.mubr.msk.f32.gmra.mrb[8].mxu0 %vm209_vm1, %v7227_v60  ;;  %5339 = vmatprep.mubr.msk.f32.mxu1 %vm209_vm1, %v6390_v63 }
 0x110   : > { %5565 = vmatprep.mubr.msk.f32.mxu0 %vm209_vm1, %v7228_v4 }
 0x112   : > { %5340 = vmatmul.mubr.msk.f32.gmra.mrb[26].mxu1 %vm209_vm1, %v7255_v38 }
 0x113   : > { %5566 = vmatmul.mubr.msk.f32.gmra.mrb[10].mxu0 %vm209_vm1, %v7229_v2  ;;  %5342 = vmatprep.mubr.msk.f32.mxu1 %vm209_vm1, %v7256_v42 }
 0x114   : > { %5568 = vmatprep.mubr.msk.f32.mxu0 %vm209_vm1, %v7230_v30 }
 0x116   : > { %5343 = vmatmul.mubr.msk.f32.gmra.mrb[28].mxu1 %vm209_vm1, %v7257_v43 }
 0x117   : > { %5569 = vmatmul.mubr.msk.f32.gmra.mrb[12].mxu0 %vm209_vm1, %v6427_v12  ;;  %5345 = vmatprep.mubr.msk.f32.mxu1 %vm209_vm1, %v7258_v45  ;;  %v7259_v12 = vld [vmem:[#allocation37_spill] sm:$0xff] }
 0x118   : > { %5571 = vmatprep.mubr.msk.f32.mxu0 %vm209_vm1, %v7231_v41 }
 0x11a   : > { %5346 = vmatmul.mubr.msk.f32.gmra.mrb[30].mxu1 %vm209_vm1, %v6729_v40 }
 0x11b   : > { %5572 = vmatmul.mubr.msk.f32.gmra.mrb[14].mxu0 %vm209_vm1, %v6442_v3  ;;  %5374 = vmatprep.mubr.msk.f32.mxu1 %vm209_vm1, %v6559_v5 }
 0x11c   : > { %5574 = vmatprep.mubr.msk.f32.mxu0 %vm209_vm1, %v6445_v62 }
 0x11e   : > { %5375 = vmatmul.mubr.msk.f32.vlgmr.msra.gmra.mrb[16].mxu1 %vm209_vm1, %v6575_v7 }
 0x11f   : > { %5575 = vmatmul.mubr.msk.f32.gmra.mrb[16].mxu0 %vm209_vm1, %v6460_v8  ;;  %5377 = vmatprep.mubr.msk.f32.mxu1 %vm209_vm1, %v6580_v14  ;;  %v4809_v14 = vld [vmem:[%s6092_s9 + $0x19a] sm:$0xff] }
 0x120   : > { %5577 = vmatprep.mubr.msk.f32.mxu0 %vm209_vm1, %v6465_v0 }
 0x122   : > { %5378 = vmatmul.mubr.msk.f32.gmra.mrb[18].mxu1 %vm209_vm1, %v6593_v44 }
 0x123   : > { %5578 = vmatmul.mubr.msk.f32.gmra.mrb[18].mxu0 %vm209_vm1, %v7232_v9  ;;  %5380 = vmatprep.mubr.msk.f32.mxu1 %vm209_vm1, %v6596_v18  ;;  %v7260_v18 = vld [vmem:[#allocation38_spill] sm:$0xff] }
 0x124   : > { %5580 = vmatprep.mubr.msk.f32.mxu0 %vm209_vm1, %v7233_v13 }
 0x126   : > { %5381 = vmatmul.mubr.msk.f32.gmra.mrb[20].mxu1 %vm209_vm1, %v6607_v20  ;;  %v4810_v20 = vld [vmem:[%s6092_s9 + $0x1a2] sm:$0xff] }
 0x127   : > { %5581 = vmatmul.mubr.msk.f32.gmra.mrb[20].mxu0 %vm209_vm1, %v7234_v15  ;;  %5383 = vmatprep.mubr.msk.f32.mxu1 %vm209_vm1, %v6610_v22 }
 0x128   : > { %5583 = vmatprep.mubr.msk.f32.mxu0 %vm209_vm1, %v7235_v17 }
 0x12a   : > { %5384 = vmatmul.mubr.msk.f32.gmra.mrb[22].mxu1 %vm209_vm1, %v6621_v24 }
 0x12b   : > { %5584 = vmatmul.mubr.msk.f32.gmra.mrb[22].mxu0 %vm209_vm1, %v7236_v19  ;;  %5386 = vmatprep.mubr.msk.f32.mxu1 %vm209_vm1, %v6624_v26 }
 0x12c   : > { %5586 = vmatprep.mubr.msk.f32.mxu0 %vm209_vm1, %v7237_v21 }
 0x12e   : > { %5387 = vmatmul.mubr.msk.f32.gmra.mrb[24].mxu1 %vm209_vm1, %v6635_v28 }
 0x12f   : > { %5587 = vmatmul.mubr.msk.f32.gmra.mrb[24].mxu0 %vm209_vm1, %v7238_v23  ;;  %5389 = vmatprep.mubr.msk.f32.mxu1 %vm209_vm1, %v7248_v10 }
 0x130   : > { %5589 = vmatprep.mubr.msk.f32.mxu0 %vm209_vm1, %v6523_v6 }
 0x132   : > { %5390 = vmatmul.mubr.msk.f32.gmra.mrb[26].mxu1 %vm209_vm1, %v6649_v32 }
 0x133   : > { %5590 = vmatmul.mubr.msk.f32.gmra.mrb[26].mxu0 %vm209_vm1, %v7239_v25  ;;  %5392 = vmatprep.mubr.msk.f32.mxu1 %vm209_vm1, %v6652_v34 }
 0x134   : > { %5592 = vmatprep.mubr.msk.f32.mxu0 %vm209_vm1, %v7259_v12 }
 0x136   : > { %5393 = vmatmul.mubr.msk.f32.gmra.mrb[28].mxu1 %vm209_vm1, %v6663_v36 }
 0x137   : > { %5593 = vmatmul.mubr.msk.f32.gmra.mrb[28].mxu0 %vm209_vm1, %v7260_v18  ;;  %5395 = vmatprep.mubr.msk.f32.mxu1 %vm209_vm1, %v6856_v29 }
 0x138   : > { %5595 = vmatprep.mubr.msk.f32.mxu0 %vm209_vm1, %v4809_v14 }
 0x13a   : > { %5396 = vmatmul.mubr.msk.f32.gmra.mrb[30].mxu1 %vm209_vm1, %v6867_v1 }
 0x13b   : > { %5596 = vmatmul.mubr.msk.f32.gmra.mrb[30].mxu0 %vm209_vm1, %v4810_v20 }
 0x1b1   : > { %v5302_v22 = vpop.f32.mrb[0].mxu1 }
 0x1b2   : > { %v1675_v24 = vpop.f32.mrb[1].mxu1  ;;  %v5600_v56 = vadd.f32 %v5302_v22, %v7013_v53 }
 0x1b3   : > { %v5602_v57 = vadd.f32 %v7013_v53, %v1675_v24 }
 0x1b5   : > { %v5305_v26 = vpop.f32.mrb[2].mxu1 }
 0x1b6   : > { %v1685_v28 = vpop.f32.mrb[3].mxu1  ;;  %v5604_v63 = vadd.f32 %v5305_v26, %v7013_v53 }
 0x1b7   : > { %v5606_v0 = vadd.f32 %v7013_v53, %v1685_v28 }
 0x1b9   : > { %v5308_v32 = vpop.f32.mrb[4].mxu1 }
 0x1ba   : > { %v1695_v34 = vpop.f32.mrb[5].mxu1  ;;  %v5608_v5 = vadd.f32 %v5308_v32, %v7013_v53 }
 0x1bb   : > { %v5610_v7 = vadd.f32 %v7013_v53, %v1695_v34 }
 0x1bd   : > { %v5311_v36 = vpop.f32.mrb[6].mxu1 }
 0x1be   : > { %v1705_v46 = vpop.f32.mrb[7].mxu1  ;;  %v5612_v40 = vadd.f32 %v5311_v36, %v7013_v53 }
 0x1bf   : > { %v5614_v60 = vadd.f32 %v7013_v53, %v1705_v46 }
 0x1c1   : > { %v5314_v47 = vpop.f32.mrb[8].mxu1 }
 0x1c2   : > { %v1715_v48 = vpop.f32.mrb[9].mxu1  ;;  %v5616_v17 = vadd.f32 %v5314_v47, %v7013_v53 }
 0x1c3   : > { %v5618_v19 = vadd.f32 %v7013_v53, %v1715_v48 }
 0x1c5   : > { %v5317_v49 = vpop.f32.mrb[10].mxu1 }
 0x1c6   : > { %v1725_v50 = vpop.f32.mrb[11].mxu1  ;;  %v5620_v27 = vadd.f32 %v5317_v49, %v7013_v53 }
 0x1c7   : > { %v5622_v29 = vadd.f32 %v7013_v53, %v1725_v50 }
 0x1c9   : > { %v5320_v51 = vpop.f32.mrb[12].mxu1 }
 0x1ca   : > { %v1735_v52 = vpop.f32.mrb[13].mxu1  ;;  %v5624_v16 = vadd.f32 %v5320_v51, %v7013_v53 }
 0x1cb   : > { %v5626_v37 = vadd.f32 %v7013_v53, %v1735_v52 }
 0x1cd   : > { %v5323_v54 = vpop.f32.mrb[14].mxu1 }
 0x1ce   : > { %v1745_v55 = vpop.f32.mrb[15].mxu1  ;;  %v5628_v45 = vadd.f32 %v5323_v54, %v7013_v53 }
 0x1cf   : > { %v5630_v12 = vadd.f32 %v7013_v53, %v1745_v55 }
 0x1d2   : > { %v5552_v58 = vpop.f32.mrb[0].mxu0 }
 0x1d3   : > { %v5601_v59 = vadd.f32 %v5600_v56, %v5552_v58  ;;  %v3946_v61 = vpop.f32.mrb[1].mxu0 }
 0x1d4   : > { %v5603_v62 = vadd.f32 %v5602_v57, %v3946_v61 }
 0x1d5   : > { %4234 = vst [vmem:[%s7020_s6 + $0x8] sm:$0xff] %v5601_v59 }
 0x1d6   : > { %4233 = vst [vmem:[%s7020_s6] sm:$0xff] %v5603_v62  ;;  %v5555_v2 = vpop.f32.mrb[2].mxu0 }
 0x1d7   : > { %v5605_v3 = vadd.f32 %v5604_v63, %v5555_v2  ;;  %v3956_v4 = vpop.f32.mrb[3].mxu0 }
 0x1d8   : > { %v5607_v8 = vadd.f32 %v5606_v0, %v3956_v4 }
 0x1d9   : > { %4236 = vst [vmem:[%s7020_s6 + $0x18] sm:$0xff] %v5605_v3 }
 0x1da   : > { %4235 = vst [vmem:[%s7020_s6 + $0x10] sm:$0xff] %v5607_v8  ;;  %v5558_v6 = vpop.f32.mrb[4].mxu0 }
 0x1db   : > { %v5609_v44 = vadd.f32 %v5608_v5, %v5558_v6  ;;  %v3966_v30 = vpop.f32.mrb[5].mxu0 }
 0x1dc   : > { %v5611_v39 = vadd.f32 %v5610_v7, %v3966_v30 }
 0x1dd   : > { %4238 = vst [vmem:[%s7020_s6 + $0x28] sm:$0xff] %v5609_v44 }
 0x1de   : > { %4237 = vst [vmem:[%s7020_s6 + $0x20] sm:$0xff] %v5611_v39  ;;  %v5561_v41 = vpop.f32.mrb[6].mxu0 }
 0x1df   : > { %v5613_v9 = vadd.f32 %v5612_v40, %v5561_v41  ;;  %v3976_v13 = vpop.f32.mrb[7].mxu0 }
 0x1e0   : > { %v5615_v15 = vadd.f32 %v5614_v60, %v3976_v13 }
 0x1e1   : > { %4240 = vst [vmem:[%s7020_s6 + $0x38] sm:$0xff] %v5613_v9 }
 0x1e2   : > { %4239 = vst [vmem:[%s7020_s6 + $0x30] sm:$0xff] %v5615_v15  ;;  %v5564_v21 = vpop.f32.mrb[8].mxu0 }
 0x1e3   : > { %v5617_v23 = vadd.f32 %v5616_v17, %v5564_v21  ;;  %v3986_v25 = vpop.f32.mrb[9].mxu0 }
 0x1e4   : > { %v5619_v10 = vadd.f32 %v5618_v19, %v3986_v25 }
 0x1e5   : > { %4242 = vst [vmem:[%s7020_s6 + $0x48] sm:$0xff] %v5617_v23 }
 0x1e6   : > { %4241 = vst [vmem:[%s7020_s6 + $0x40] sm:$0xff] %v5619_v10  ;;  %v5567_v31 = vpop.f32.mrb[10].mxu0 }
 0x1e7   : > { %v5621_v33 = vadd.f32 %v5620_v27, %v5567_v31  ;;  %v3996_v1 = vpop.f32.mrb[11].mxu0 }
 0x1e8   : > { %v5623_v35 = vadd.f32 %v5622_v29, %v3996_v1 }
 0x1e9   : > { %4244 = vst [vmem:[%s7020_s6 + $0x58] sm:$0xff] %v5621_v33 }
 0x1ea   : > { %4243 = vst [vmem:[%s7020_s6 + $0x50] sm:$0xff] %v5623_v35  ;;  %v5570_v11 = vpop.f32.mrb[12].mxu0 }
 0x1eb   : > { %v5625_v38 = vadd.f32 %v5624_v16, %v5570_v11  ;;  %v4006_v42 = vpop.f32.mrb[13].mxu0 }
 0x1ec   : > { %v5627_v43 = vadd.f32 %v5626_v37, %v4006_v42 }
 0x1ed   : > { %4246 = vst [vmem:[%s7020_s6 + $0x68] sm:$0xff] %v5625_v38 }
 0x1ee   : > { %4245 = vst [vmem:[%s7020_s6 + $0x60] sm:$0xff] %v5627_v43  ;;  %v5573_v14 = vpop.f32.mrb[14].mxu0 }
 0x1ef   : > { %v5629_v18 = vadd.f32 %v5628_v45, %v5573_v14  ;;  %v4016_v20 = vpop.f32.mrb[15].mxu0 }
 0x1f0   : > { %v5631_v22 = vadd.f32 %v5630_v12, %v4016_v20 }
 0x1f1   : > { %4248 = vst [vmem:[%s7020_s6 + $0x78] sm:$0xff] %v5629_v18  ;;  %v5376_v24 = vpop.f32.mrb[16].mxu1 }
 0x1f2   : > { %4247 = vst [vmem:[%s7020_s6 + $0x70] sm:$0xff] %v5631_v22  ;;  %v5576_v26 = vpop.f32.mrb[16].mxu0  ;;  %v5632_v28 = vadd.f32 %v5376_v24, %v7013_v53  ;;  %v2209_v32 = vpop.f32.mrb[17].mxu1 }
 0x1f3   : > { %v4026_v34 = vpop.f32.mrb[17].mxu0  ;;  %v5634_v36 = vadd.f32 %v7013_v53, %v2209_v32 }
 0x1f4   : > { %v5633_v46 = vadd.f32 %v5632_v28, %v5576_v26 }
 0x1f5   : > { %v5635_v47 = vadd.f32 %v5634_v36, %v4026_v34  ;;  %v5379_v48 = vpop.f32.mrb[18].mxu1 }
 0x1f6   : > { %v5579_v49 = vpop.f32.mrb[18].mxu0  ;;  %4250 = vst [vmem:[%s7020_s6 + $0x88] sm:$0xff] %v5633_v46  ;;  %v5636_v50 = vadd.f32 %v5379_v48, %v7013_v53  ;;  %v2219_v51 = vpop.f32.mrb[19].mxu1 }
 0x1f7   : > { %v4036_v52 = vpop.f32.mrb[19].mxu0  ;;  %4249 = vst [vmem:[%s7020_s6 + $0x80] sm:$0xff] %v5635_v47  ;;  %v5638_v54 = vadd.f32 %v7013_v53, %v2219_v51 }
 0x1f8   : > { %v5637_v55 = vadd.f32 %v5636_v50, %v5579_v49 }
 0x1f9   : > { %v5639_v56 = vadd.f32 %v5638_v54, %v4036_v52  ;;  %v5382_v57 = vpop.f32.mrb[20].mxu1 }
 0x1fa   : > { %v5582_v58 = vpop.f32.mrb[20].mxu0  ;;  %4252 = vst [vmem:[%s7020_s6 + $0x98] sm:$0xff] %v5637_v55  ;;  %v5640_v59 = vadd.f32 %v5382_v57, %v7013_v53  ;;  %v2229_v61 = vpop.f32.mrb[21].mxu1 }
 0x1fb   : > { %v4046_v62 = vpop.f32.mrb[21].mxu0  ;;  %4251 = vst [vmem:[%s7020_s6 + $0x90] sm:$0xff] %v5639_v56  ;;  %v5642_v63 = vadd.f32 %v7013_v53, %v2229_v61 }
 0x1fc   : > { %v5641_v0 = vadd.f32 %v5640_v59, %v5582_v58 }
 0x1fd   : > { %v5643_v2 = vadd.f32 %v5642_v63, %v4046_v62  ;;  %v5385_v3 = vpop.f32.mrb[22].mxu1 }
 0x1fe   : > { %v5585_v4 = vpop.f32.mrb[22].mxu0  ;;  %4254 = vst [vmem:[%s7020_s6 + $0xa8] sm:$0xff] %v5641_v0  ;;  %v5644_v8 = vadd.f32 %v5385_v3, %v7013_v53  ;;  %v2239_v5 = vpop.f32.mrb[23].mxu1 }
 0x1ff   : > { %v4056_v7 = vpop.f32.mrb[23].mxu0  ;;  %4253 = vst [vmem:[%s7020_s6 + $0xa0] sm:$0xff] %v5643_v2  ;;  %v5646_v6 = vadd.f32 %v7013_v53, %v2239_v5 }
 0x200   : > { %v5645_v44 = vadd.f32 %v5644_v8, %v5585_v4 }
 0x201   : > { %v5647_v30 = vadd.f32 %v5646_v6, %v4056_v7  ;;  %v5388_v39 = vpop.f32.mrb[24].mxu1 }
 0x202   : > { %v5588_v40 = vpop.f32.mrb[24].mxu0  ;;  %4256 = vst [vmem:[%s7020_s6 + $0xb8] sm:$0xff] %v5645_v44  ;;  %v5648_v60 = vadd.f32 %v5388_v39, %v7013_v53  ;;  %v2249_v41 = vpop.f32.mrb[25].mxu1 }
 0x203   : > { %v4066_v9 = vpop.f32.mrb[25].mxu0  ;;  %4255 = vst [vmem:[%s7020_s6 + $0xb0] sm:$0xff] %v5647_v30  ;;  %v5650_v13 = vadd.f32 %v7013_v53, %v2249_v41 }
 0x204   : > { %v5649_v15 = vadd.f32 %v5648_v60, %v5588_v40 }
 0x205   : > { %v5651_v17 = vadd.f32 %v5650_v13, %v4066_v9  ;;  %v5391_v19 = vpop.f32.mrb[26].mxu1 }
 0x206   : > { %v5591_v21 = vpop.f32.mrb[26].mxu0  ;;  %4258 = vst [vmem:[%s7020_s6 + $0xc8] sm:$0xff] %v5649_v15  ;;  %v5652_v23 = vadd.f32 %v5391_v19, %v7013_v53  ;;  %v2259_v25 = vpop.f32.mrb[27].mxu1 }
 0x207   : > { %v4076_v10 = vpop.f32.mrb[27].mxu0  ;;  %4257 = vst [vmem:[%s7020_s6 + $0xc0] sm:$0xff] %v5651_v17  ;;  %v5654_v27 = vadd.f32 %v7013_v53, %v2259_v25 }
 0x208   : > { %v5653_v29 = vadd.f32 %v5652_v23, %v5591_v21 }
 0x209   : > { %v5655_v31 = vadd.f32 %v5654_v27, %v4076_v10  ;;  %v5394_v33 = vpop.f32.mrb[28].mxu1 }
 0x20a   : > { %v5594_v1 = vpop.f32.mrb[28].mxu0  ;;  %4260 = vst [vmem:[%s7020_s6 + $0xd8] sm:$0xff] %v5653_v29  ;;  %v5656_v35 = vadd.f32 %v5394_v33, %v7013_v53  ;;  %v2269_v16 = vpop.f32.mrb[29].mxu1 }
 0x20b   : > { %v4086_v37 = vpop.f32.mrb[29].mxu0  ;;  %4259 = vst [vmem:[%s7020_s6 + $0xd0] sm:$0xff] %v5655_v31  ;;  %v5658_v11 = vadd.f32 %v7013_v53, %v2269_v16 }
 0x20c   : > { %v5657_v38 = vadd.f32 %v5656_v35, %v5594_v1 }
 0x20d   : > { %v5659_v42 = vadd.f32 %v5658_v11, %v4086_v37  ;;  %v5397_v43 = vpop.f32.mrb[30].mxu1 }
 0x20e   : > { %v5597_v45 = vpop.f32.mrb[30].mxu0  ;;  %4262 = vst [vmem:[%s7020_s6 + $0xe8] sm:$0xff] %v5657_v38  ;;  %v5660_v12 = vadd.f32 %v5397_v43, %v7013_v53  ;;  %v2279_v14 = vpop.f32.mrb[31].mxu1 }
 0x20f   : > { %v4096_v18 = vpop.f32.mrb[31].mxu0  ;;  %4261 = vst [vmem:[%s7020_s6 + $0xe0] sm:$0xff] %v5659_v42  ;;  %v5662_v20 = vadd.f32 %v7013_v53, %v2279_v14 }
 0x210   : > { %v5661_v22 = vadd.f32 %v5660_v12, %v5597_v45 }
 0x211   : > { %v5663_v24 = vadd.f32 %v5662_v20, %v4096_v18 }
 0x212   : > { %4264 = vst [vmem:[%s7020_s6 + $0xf8] sm:$0xff] %v5661_v22 }
 0x213   : > { %4263 = vst [vmem:[%s7020_s6 + $0xf0] sm:$0xff] %v5663_v24 }
 0x214   : > { %5943 = shalt.err (!%p5940_p3)
}
 0x215   : > { %s5944_s25 = scalar_lea.hbm %s7086_s11, 4096  ;;  %s5948_s28 = scalar_lea.hbm %s7138_s3, 8192 }
 0x216   : > { %p5945_p4 = scmp.ne.s32.totalorder %s7086_s11, %s5944_s25  ;;  %p5949_p9 = scmp.lt.u32.totalorder %s7086_s11, %s7138_s3 }
 0x217   : > { %p5950_p10 = scmp.lt.u32.totalorder %s5948_s28, %s5944_s25  ;;  %p5952_p12 = scmp.lt.u32.totalorder %s5944_s25, %s7086_s11 }
 0x218   : > { %p5946_p7 = pnand %p5945_p4, %p6055_p5 }
 0x219   : > { %p5951_p11 = por %p5950_p10, %p5949_p9 }
 0x21a   : > { %p5947_p8 = pneg %p5946_p7 }
 0x21b   : > { %p5953_p13 = por %p5952_p12, %p5951_p11 }
 0x21d   : > { %p5954_p0 = pnand %p5953_p13, %p5947_p8 }
 0x21f   : > { %5957 = shalt.err (!%p5954_p0)
}
 0x220   : > { %s5995_s4 = smov 128   ;;  %s5996_s5 = smov 8  }
 0x221   : > { %5889 = dma.vmem_to_hbm [thread:$0]  (%p6055_p5), %s7088_s8, 4096, %s7086_s11, %s7094_s16, %s5995_s4, %s5995_s4, %s5996_s5  }
 0x222 PF: > { %p5895_p1 = scmp.ge.s32.totalorder %s5992_s15, 2  ;;  %s4294_s6 = sand.u32 1, %s5980_s12  }
 0x223   : > { %s4295_s7 = scalar_lea.sflag [#allocation4], %s4294_s6 }
 0x224   : > { %p5892_p2 = pnand %p5895_p1, %p6059_p6 }
 0x226   : > { %5975 = dma.done.wait (!%p5892_p2), %s4295_s7, 4096  }
 0x227   : > { %5977 = vsyncadd (!%p5892_p2), %s4295_s7, 4294963200  ;;  %p13_p3 = scmp.ge.s32.totalorder %s6042_s18, 4   ;;  %s7261_s12 = smov %s5984_s13 }
 0x228   : > { %s7262_s13 = smov %s5988_s14  ;;  %s7263_s14 = smov %s6053_s21 }
 0x229   : > { %s7264_s15 = smov %s6042_s18  ;;  %15 = sbr.rel (!%p13_p3) target bundleno = 3 (0x3), region = 77 }
 0x230   :  { %4300 = vsyncpa [#allocation4], 1 }
 0x231   :  { %4302 = vsyncpa [#allocation4 + $0x1], 1 }

</bundles_post_ra>
